<compile_context>
chip_gen: v5e
topology: v5e:2x2
jax: 0.10.0
libtpu: 0.0.40
codegen_flags: <defaults>
</compile_context>

<pallas_src>
import math
import numpy as np
import jax
import jax.numpy as jnp
from jax import lax
from jax.experimental import pallas as pl
from jax.experimental.pallas import tpu as pltpu

B, S, D = 2, 8, 64          # batch, seq_len, d_model
H = 8                       # n_heads (must equal S for the torch RoPE broadcast quirk)
DH = D // H                 # head_dim = 8
DFF = 128                   # d_ff
T = B * S                   # 16 flattened tokens
R = T * H                   # 128 (token, head) rows
EPS = 1e-5
THETA = 10000.0
SCALE = 1.0 / math.sqrt(DH)

assert H == S, "torch RoPE broadcast quirk requires n_heads == seq_len"
_LOG2H = H.bit_length() - 1
_LOG2DH = DH.bit_length() - 1
assert (1 << _LOG2H) == H and (1 << _LOG2DH) == DH


# ----------------------------- shared math helpers -----------------------------
def _erf_f32(x):
    # Abramowitz & Stegun 7.1.26 rational approximation; with the approx EUP reciprocal
    # the overall error is ~1e-4 level -- comfortably inside the 2e-2 tolerance.
    a1, a2, a3, a4, a5 = 0.254829592, -0.284496736, 1.421413741, -1.453152027, 1.061405429
    pp = 0.3275911
    sgn = jnp.where(x >= 0.0, 1.0, -1.0)
    ax = jnp.abs(x)
    t = pl.reciprocal(1.0 + pp * ax, approx=True)
    poly = ((((a5 * t + a4) * t + a3) * t + a2) * t + a1) * t
    return sgn * (1.0 - poly * jnp.exp(-(ax * ax)))


def _gelu_exact(x):
    # nn.GELU() default (approximate='none'): 0.5 * x * (1 + erf(x / sqrt(2)))
    return 0.5 * x * (1.0 + _erf_f32(x * (1.0 / math.sqrt(2.0))))


def _layernorm(x, g, b):
    mu = jnp.mean(x, axis=-1, keepdims=True)
    c = x - mu
    var = jnp.mean(c * c, axis=-1, keepdims=True)
    return c * lax.rsqrt(var + EPS) * g + b


def _iota(shape, dim):
    return lax.broadcasted_iota(jnp.int32, shape, dim)


def _mask(a, b):
    # 0/1 f32 mask [a == b]; H and DH are powers of two so all index math is >> / &.
    return jnp.where(a == b, 1.0, 0.0).astype(jnp.float32)


# --------------------------------- fused kernel ----------------------------------
def _block_kernel(x_ref, wqkv_ref, wo_ref, w1_ref, w2_ref, vecs_ref, o_ref):
    """Whole TransformerBlock in one invocation; everything VMEM-resident.

    Row index r of every (R, .) slab is r = t*H + h  (flat token t = b*S + s, head h).
    """
    f32 = jnp.float32

    x = x_ref[...]                                        # (T, D) = (16, 64)
    vecs = vecs_ref[...]                                  # (8, 3*D) packed vectors
    bqkv = vecs[0:1, :]                                   # (1, 192)
    bo = vecs[1:2, :D]
    g1 = vecs[2:3, :D]
    beta1 = vecs[3:4, :D]
    b1 = vecs[4:5, :DFF]
    b2 = vecs[5:6, :D]
    g2 = vecs[6:7, :D]
    beta2 = vecs[7:8, :D]

    # ---- 0/1 selection & mask matrices, built on the VPU (no extra operands/DMAs) ----
    rep = _mask(_iota((R, T), 0) >> _LOG2H, _iota((R, T), 1))                  # [t == t']
    rept = _mask(_iota((T, R), 0), _iota((T, R), 1) >> _LOG2H)                 # rep^T
    hmask = _mask(_iota((R, D), 0) & (H - 1), _iota((R, D), 1) >> _LOG2DH)     # [h == j//DH]
    cseld = _mask(_iota((D, DH), 0) & (DH - 1), _iota((D, DH), 1))             # [j%DH == d]
    cselh = _mask(_iota((R, H), 0) & (H - 1), _iota((R, H), 1))                # [g == g']
    bdmask = _mask(_iota((R, R), 0) >> _LOG2H, _iota((R, R), 1) >> _LOG2H)     # [t == t']

    # ---- fused q/k/v projection (RoPE and 1/sqrt(head_dim) pre-folded into wq/bq, wk/bk) ----
    qkv = jnp.dot(x, wqkv_ref[...], preferred_element_type=f32)                # (T, 3D)
    qkv_r = jnp.dot(rep, qkv, preferred_element_type=f32) + bqkv               # (R, 3D)

    def head_compact(blk):
        # blk[(t,h), j] -> out[(t,h), d] = blk[(t,h), h*DH + d]
        return jnp.dot(blk * hmask, cseld, preferred_element_type=f32)         # (R, DH)

    qb = head_compact(qkv_r[:, 0:D])
    kb = head_compact(qkv_r[:, D:2 * D])
    vb = head_compact(qkv_r[:, 2 * D:3 * D])

    # ---- attention across the H heads, independently per (batch, position) ----
    full_sc = lax.dot_general(qb, kb, (((1,), (1,)), ((), ())),
                              preferred_element_type=f32)                      # (R, R)
    scores = jnp.dot(full_sc * bdmask, cselh, preferred_element_type=f32)      # (R, H)
    m = jnp.max(scores, axis=-1, keepdims=True)
    p = jnp.exp(scores - m)
    attn = p * pl.reciprocal(jnp.sum(p, axis=-1, keepdims=True), approx=True)  # (R, H)

    attn_exp = lax.dot_general(attn, cselh, (((1,), (1,)), ((), ())),
                               preferred_element_type=f32) * bdmask            # (R, R)
    out_b = jnp.dot(attn_exp, vb, preferred_element_type=f32)                  # (R, DH)

    # ---- merge heads back to the (T, D) layout: merged[t, h*DH+d] = out_b[(t,h), d] ----
    wide = lax.dot_general(out_b, cseld, (((1,), (1,)), ((), ())),
                           preferred_element_type=f32) * hmask                 # (R, D)
    merged = jnp.dot(rept, wide, preferred_element_type=f32)                   # (T, D)

    # ---- o_proj + residual + LN1 + FFN (exact GELU) + residual + LN2 ----
    attended = jnp.dot(merged, wo_ref[...], preferred_element_type=f32) + bo
    h1 = _layernorm(x + attended, g1, beta1)
    z = jnp.dot(h1, w1_ref[...], preferred_element_type=f32) + b1
    ff = jnp.dot(_gelu_exact(z), w2_ref[...], preferred_element_type=f32) + b2
    o_ref[...] = _layernorm(h1 + ff, g2, beta2)


# ------------------------------ pallas_call wiring -------------------------------
_VMEM_SPEC = pl.BlockSpec(memory_space=pltpu.MemorySpace.VMEM)   # whole array in VMEM

_fused_call = pl.pallas_call(
    _block_kernel,
    out_shape=jax.ShapeDtypeStruct((T, D), jnp.float32),
    in_specs=[_VMEM_SPEC] * 6,
    out_specs=_VMEM_SPEC,
    # Insurance per review: keep-everything-resident only works because the shapes are
    # tiny (~200 KB total); scaling D/DFF up would require K-dim BlockSpec tiling.
    compiler_params=pltpu.CompilerParams(vmem_limit_bytes=32 * 1024 * 1024),
)


@jax.jit
def transformer_block_forward(x, packed):
    y = _fused_call(x.reshape(T, D), packed["wqkv"], packed["wo"],
                    packed["w1"], packed["w2"], packed["vecs"])
    return y.reshape(B, S, D)


# ------------------------ constants & ahead-of-time folding -----------------------
def prepare_params(params, rope_mat):
    """Fold RoPE + attention scale into the Q/K projections and pack operands."""
    hp = lax.Precision.HIGHEST
    wq = jnp.dot(params["wq"], rope_mat, precision=hp) * SCALE
    bq = jnp.dot(params["bq"], rope_mat, precision=hp) * SCALE
    wk = jnp.dot(params["wk"], rope_mat, precision=hp)
    bk = jnp.dot(params["bk"], rope_mat, precision=hp)
    wqkv = jnp.concatenate([wq, wk, params["wv"]], axis=1)          # (D, 3D)
    bqkv = jnp.concatenate([bq, bk, params["bv"]], axis=1)          # (1, 3D)

    def row(v):
        return jnp.pad(v, ((0, 0), (0, 3 * D - v.shape[1])))

    vecs = jnp.concatenate([
        row(bqkv),                 # row 0
        row(params["bo"]),         # row 1
        row(params["g1"]),         # row 2
        row(params["beta1"]),      # row 3
        row(params["b1"]),         # row 4
        row(params["b2"]),         # row 5
        row(params["g2"]),         # row 6
        row(params["beta2"]),      # row 7
    ], axis=0)                                                       # (8, 3D)

    return {"wqkv": wqkv, "wo": params["wo"], "w1": params["w1"],
            "w2": params["w2"], "vecs": vecs}


# ------------------------------- RoPE constants ----------------------------------
def _build_rope():
    # precompute_freqs_cis(dim=head_dim): freq[p] = theta^(-2p/dim)
    inv_freq = 1.0 / (THETA ** (np.arange(0, DH, 2)[: DH // 2].astype(np.float32) / DH))
    pos = np.arange(H, dtype=np.float32)        # torch broadcast quirk: index == head index
    ang = np.outer(pos, inv_freq)               # (H, DH//2)
    cos, sin = np.cos(ang), np.sin(ang)
    rot = np.zeros((D, D), dtype=np.float32)    # out = q @ rot reproduces the complex rotation
    for h in range(H):
        for p in range(DH // 2):
            e = h * DH + 2 * p
            o = e + 1
            rot[e, e] = cos[h, p]
            rot[o, e] = -sin[h, p]
            rot[e, o] = sin[h, p]
            rot[o, o] = cos[h, p]
    return (jnp.asarray(rot),
            jnp.asarray(cos, dtype=jnp.float32),
            jnp.asarray(sin, dtype=jnp.float32))


# ------------------------------ pure-JAX reference --------------------------------
def reference_forward(x, p, cos_hp, sin_hp):
    hp = lax.Precision.HIGHEST

    def lin(t, w, b):
        return jnp.matmul(t, w, precision=hp) + b[0]

    q = lin(x, p["wq"], p["bq"]).reshape(B, S, H, DH)
    k = lin(x, p["wk"], p["bk"]).reshape(B, S, H, DH)
    v = lin(x, p["wv"], p["bv"]).reshape(B, S, H, DH)

    def rope(t):
        e, o = t[..., 0::2], t[..., 1::2]
        c = cos_hp[None, None]                  # (1, 1, H, DH//2) -> indexed by HEAD axis
        s = sin_hp[None, None]
        return jnp.stack([e * c - o * s, e * s + o * c], axis=-1).reshape(B, S, H, DH)

    q, k = rope(q), rope(k)
    scores = jnp.einsum("bshd,bsgd->bshg", q, k, precision=hp) * SCALE   # attn across heads
    attn = jax.nn.softmax(scores, axis=-1)
    out = jnp.einsum("bshg,bsgd->bshd", attn, v, precision=hp).reshape(B, S, D)
    attended = lin(out, p["wo"], p["bo"])
    h1 = _layernorm(x + attended, p["g1"][0], p["beta1"][0])
    z = lin(h1, p["w1"], p["b1"])
    ff = lin(jax.nn.gelu(z, approximate=False), p["w2"], p["b2"])
    return _layernorm(h1 + ff, p["g2"][0], p["beta2"][0])


# ------------------------------------ main ----------------------------------------
if __name__ == "__main__":
    rope_mat, cos_hp, sin_hp = _build_rope()

    key = jax.random.PRNGKey(0)
    ks = jax.random.split(key, 17)

    def init(k, shape, scale):
        return (scale * jax.random.normal(k, shape, dtype=jnp.float32)).astype(jnp.float32)

    params = {
        "wq": init(ks[0], (D, D), 0.05),  "bq": init(ks[1], (1, D), 0.02),
        "wk": init(ks[2], (D, D), 0.05),  "bk": init(ks[3], (1, D), 0.02),
        "wv": init(ks[4], (D, D), 0.05),  "bv": init(ks[5], (1, D), 0.02),
        "wo": init(ks[6], (D, D), 0.05),  "bo": init(ks[7], (1, D), 0.02),
        "g1": 1.0 + init(ks[8], (1, D), 0.1),  "beta1": init(ks[9], (1, D), 0.05),
        "w1": init(ks[10], (D, DFF), 0.05),    "b1": init(ks[11], (1, DFF), 0.02),
        "w2": init(ks[12], (DFF, D), 0.05),    "b2": init(ks[13], (1, D), 0.02),
        "g2": 1.0 + init(ks[14], (1, D), 0.1), "beta2": init(ks[15], (1, D), 0.05),
    }
    x = jax.random.normal(ks[16], (B, S, D), dtype=jnp.float32)

    packed = prepare_params(params, rope_mat)

    out = transformer_block_forward(x, packed)
    out = jax.block_until_ready(out)
    assert out.shape == (B, S, D) and out.dtype == jnp.float32

    ref = reference_forward(x, params, cos_hp, sin_hp)
    max_err = float(jnp.max(jnp.abs(out - ref)))
    assert max_err < 2e-2, f"kernel/reference mismatch: max abs err = {max_err}"

    print("KERNEL_OK")
</pallas_src>

<mosaic_0001>
module attributes {stable_mosaic.version = 11 : i64} {
  func.func @_block_kernel(%arg0: memref<16x64xf32, #tpu.memory_space<vmem>>, %arg1: memref<64x192xf32, #tpu.memory_space<vmem>>, %arg2: memref<64x64xf32, #tpu.memory_space<vmem>>, %arg3: memref<64x128xf32, #tpu.memory_space<vmem>>, %arg4: memref<128x64xf32, #tpu.memory_space<vmem>>, %arg5: memref<8x192xf32, #tpu.memory_space<vmem>>, %arg6: memref<16x64xf32, #tpu.memory_space<vmem>>) attributes {dimension_semantics = [], scalar_prefetch = 0 : i64, scratch_operands = 0 : i64, tpu.core_type = #tpu.core_type<tc>} {
    %c0 = arith.constant 0 : index
    %c0_0 = arith.constant 0 : index
    %0 = vector.load %arg0[%c0, %c0_0] : memref<16x64xf32, #tpu.memory_space<vmem>>, vector<16x64xf32>
    %c0_1 = arith.constant 0 : index
    %c0_2 = arith.constant 0 : index
    %1 = vector.load %arg5[%c0_1, %c0_2] : memref<8x192xf32, #tpu.memory_space<vmem>>, vector<8x192xf32>
    %2 = vector.extract_strided_slice %1 {offsets = [0, 0], sizes = [1, 192], strides = [1, 1]} : vector<8x192xf32> to vector<1x192xf32>
    %3 = vector.extract_strided_slice %1 {offsets = [1, 0], sizes = [1, 64], strides = [1, 1]} : vector<8x192xf32> to vector<1x64xf32>
    %4 = vector.extract_strided_slice %1 {offsets = [2, 0], sizes = [1, 64], strides = [1, 1]} : vector<8x192xf32> to vector<1x64xf32>
    %5 = vector.extract_strided_slice %1 {offsets = [3, 0], sizes = [1, 64], strides = [1, 1]} : vector<8x192xf32> to vector<1x64xf32>
    %6 = vector.extract_strided_slice %1 {offsets = [4, 0], sizes = [1, 128], strides = [1, 1]} : vector<8x192xf32> to vector<1x128xf32>
    %7 = vector.extract_strided_slice %1 {offsets = [5, 0], sizes = [1, 64], strides = [1, 1]} : vector<8x192xf32> to vector<1x64xf32>
    %8 = vector.extract_strided_slice %1 {offsets = [6, 0], sizes = [1, 64], strides = [1, 1]} : vector<8x192xf32> to vector<1x64xf32>
    %9 = vector.extract_strided_slice %1 {offsets = [7, 0], sizes = [1, 64], strides = [1, 1]} : vector<8x192xf32> to vector<1x64xf32>
    %10 = tpu.iota {dimensions = array<i32: 0>} : vector<128x16xi32>
    %c3_i32 = arith.constant 3 : i32
    %11 = vector.broadcast %c3_i32 : i32 to vector<128x16xi32>
    %12 = arith.shrsi %10, %11 : vector<128x16xi32>
    %13 = tpu.iota {dimensions = array<i32: 1>} : vector<128x16xi32>
    %14 = arith.cmpi eq, %12, %13 : vector<128x16xi32>
    %cst = arith.constant 1.000000e+00 : f32
    %cst_3 = arith.constant 0.000000e+00 : f32
    %15 = vector.broadcast %cst : f32 to vector<128x16xf32>
    %16 = vector.broadcast %cst_3 : f32 to vector<128x16xf32>
    %17 = arith.select %14, %15, %16 : vector<128x16xi1>, vector<128x16xf32>
    %18 = tpu.iota {dimensions = array<i32: 0>} : vector<16x128xi32>
    %19 = tpu.iota {dimensions = array<i32: 1>} : vector<16x128xi32>
    %c3_i32_4 = arith.constant 3 : i32
    %20 = vector.broadcast %c3_i32_4 : i32 to vector<16x128xi32>
    %21 = arith.shrsi %19, %20 : vector<16x128xi32>
    %22 = arith.cmpi eq, %18, %21 : vector<16x128xi32>
    %cst_5 = arith.constant 1.000000e+00 : f32
    %cst_6 = arith.constant 0.000000e+00 : f32
    %23 = vector.broadcast %cst_5 : f32 to vector<16x128xf32>
    %24 = vector.broadcast %cst_6 : f32 to vector<16x128xf32>
    %25 = arith.select %22, %23, %24 : vector<16x128xi1>, vector<16x128xf32>
    %26 = tpu.iota {dimensions = array<i32: 0>} : vector<128x64xi32>
    %c7_i32 = arith.constant 7 : i32
    %27 = vector.broadcast %c7_i32 : i32 to vector<128x64xi32>
    %28 = arith.andi %26, %27 : vector<128x64xi32>
    %29 = tpu.iota {dimensions = array<i32: 1>} : vector<128x64xi32>
    %c3_i32_7 = arith.constant 3 : i32
    %30 = vector.broadcast %c3_i32_7 : i32 to vector<128x64xi32>
    %31 = arith.shrsi %29, %30 : vector<128x64xi32>
    %32 = arith.cmpi eq, %28, %31 : vector<128x64xi32>
    %cst_8 = arith.constant 1.000000e+00 : f32
    %cst_9 = arith.constant 0.000000e+00 : f32
    %33 = vector.broadcast %cst_8 : f32 to vector<128x64xf32>
    %34 = vector.broadcast %cst_9 : f32 to vector<128x64xf32>
    %35 = arith.select %32, %33, %34 : vector<128x64xi1>, vector<128x64xf32>
    %36 = tpu.iota {dimensions = array<i32: 0>} : vector<64x8xi32>
    %c7_i32_10 = arith.constant 7 : i32
    %37 = vector.broadcast %c7_i32_10 : i32 to vector<64x8xi32>
    %38 = arith.andi %36, %37 : vector<64x8xi32>
    %39 = tpu.iota {dimensions = array<i32: 1>} : vector<64x8xi32>
    %40 = arith.cmpi eq, %38, %39 : vector<64x8xi32>
    %cst_11 = arith.constant 1.000000e+00 : f32
    %cst_12 = arith.constant 0.000000e+00 : f32
    %41 = vector.broadcast %cst_11 : f32 to vector<64x8xf32>
    %42 = vector.broadcast %cst_12 : f32 to vector<64x8xf32>
    %43 = arith.select %40, %41, %42 : vector<64x8xi1>, vector<64x8xf32>
    %44 = tpu.iota {dimensions = array<i32: 0>} : vector<128x8xi32>
    %c7_i32_13 = arith.constant 7 : i32
    %45 = vector.broadcast %c7_i32_13 : i32 to vector<128x8xi32>
    %46 = arith.andi %44, %45 : vector<128x8xi32>
    %47 = tpu.iota {dimensions = array<i32: 1>} : vector<128x8xi32>
    %48 = arith.cmpi eq, %46, %47 : vector<128x8xi32>
    %cst_14 = arith.constant 1.000000e+00 : f32
    %cst_15 = arith.constant 0.000000e+00 : f32
    %49 = vector.broadcast %cst_14 : f32 to vector<128x8xf32>
    %50 = vector.broadcast %cst_15 : f32 to vector<128x8xf32>
    %51 = arith.select %48, %49, %50 : vector<128x8xi1>, vector<128x8xf32>
    %52 = tpu.iota {dimensions = array<i32: 0>} : vector<128x128xi32>
    %c3_i32_16 = arith.constant 3 : i32
    %53 = vector.broadcast %c3_i32_16 : i32 to vector<128x128xi32>
    %54 = arith.shrsi %52, %53 : vector<128x128xi32>
    %55 = tpu.iota {dimensions = array<i32: 1>} : vector<128x128xi32>
    %c3_i32_17 = arith.constant 3 : i32
    %56 = vector.broadcast %c3_i32_17 : i32 to vector<128x128xi32>
    %57 = arith.shrsi %55, %56 : vector<128x128xi32>
    %58 = arith.cmpi eq, %54, %57 : vector<128x128xi32>
    %cst_18 = arith.constant 1.000000e+00 : f32
    %cst_19 = arith.constant 0.000000e+00 : f32
    %59 = vector.broadcast %cst_18 : f32 to vector<128x128xf32>
    %60 = vector.broadcast %cst_19 : f32 to vector<128x128xf32>
    %61 = arith.select %58, %59, %60 : vector<128x128xi1>, vector<128x128xf32>
    %c0_20 = arith.constant 0 : index
    %c0_21 = arith.constant 0 : index
    %62 = vector.load %arg1[%c0_20, %c0_21] : memref<64x192xf32, #tpu.memory_space<vmem>>, vector<64x192xf32>
    %cst_22 = arith.constant dense<0.000000e+00> : vector<16x192xf32>
    %63 = tpu.matmul %0, %62, %cst_22 {dimension_numbers = #tpu.dot_dimension_numbers<[1], [0], [0], [1], [0, 0, 1, 1], [], []>} : vector<16x64xf32>, vector<64x192xf32>, vector<16x192xf32> -> vector<16x192xf32>
    %cst_23 = arith.constant dense<0.000000e+00> : vector<128x192xf32>
    %64 = tpu.matmul %17, %63, %cst_23 {dimension_numbers = #tpu.dot_dimension_numbers<[1], [0], [0], [1], [0, 0, 1, 1], [], []>} : vector<128x16xf32>, vector<16x192xf32>, vector<128x192xf32> -> vector<128x192xf32>
    %65 = vector.broadcast %2 : vector<1x192xf32> to vector<128x192xf32>
    %66 = arith.addf %64, %65 : vector<128x192xf32>
    %67 = vector.extract_strided_slice %66 {offsets = [0, 0], sizes = [128, 64], strides = [1, 1]} : vector<128x192xf32> to vector<128x64xf32>
    %68 = arith.mulf %67, %35 : vector<128x64xf32>
    %cst_24 = arith.constant dense<0.000000e+00> : vector<128x8xf32>
    %69 = tpu.matmul %68, %43, %cst_24 {dimension_numbers = #tpu.dot_dimension_numbers<[1], [0], [0], [1], [0, 0, 1, 1], [], []>} : vector<128x64xf32>, vector<64x8xf32>, vector<128x8xf32> -> vector<128x8xf32>
    %70 = vector.extract_strided_slice %66 {offsets = [0, 64], sizes = [128, 64], strides = [1, 1]} : vector<128x192xf32> to vector<128x64xf32>
    %71 = arith.mulf %70, %35 : vector<128x64xf32>
    %cst_25 = arith.constant dense<0.000000e+00> : vector<128x8xf32>
    %72 = tpu.matmul %71, %43, %cst_25 {dimension_numbers = #tpu.dot_dimension_numbers<[1], [0], [0], [1], [0, 0, 1, 1], [], []>} : vector<128x64xf32>, vector<64x8xf32>, vector<128x8xf32> -> vector<128x8xf32>
    %73 = vector.extract_strided_slice %66 {offsets = [0, 128], sizes = [128, 64], strides = [1, 1]} : vector<128x192xf32> to vector<128x64xf32>
    %74 = arith.mulf %73, %35 : vector<128x64xf32>
    %cst_26 = arith.constant dense<0.000000e+00> : vector<128x8xf32>
    %75 = tpu.matmul %74, %43, %cst_26 {dimension_numbers = #tpu.dot_dimension_numbers<[1], [0], [0], [1], [0, 0, 1, 1], [], []>} : vector<128x64xf32>, vector<64x8xf32>, vector<128x8xf32> -> vector<128x8xf32>
    %cst_27 = arith.constant dense<0.000000e+00> : vector<128x128xf32>
    %76 = tpu.matmul %69, %72, %cst_27 {dimension_numbers = #tpu.dot_dimension_numbers<[1], [1], [0], [0], [0, 0, 1, 0], [], []>} : vector<128x8xf32>, vector<128x8xf32>, vector<128x128xf32> -> vector<128x128xf32>
    %77 = arith.mulf %76, %61 : vector<128x128xf32>
    %cst_28 = arith.constant dense<0.000000e+00> : vector<128x8xf32>
    %78 = tpu.matmul %77, %51, %cst_28 {dimension_numbers = #tpu.dot_dimension_numbers<[1], [0], [0], [1], [0, 0, 1, 1], [], []>} : vector<128x128xf32>, vector<128x8xf32>, vector<128x8xf32> -> vector<128x8xf32>
    %cst_29 = arith.constant dense<0xFF800000> : vector<128xf32>
    %79 = vector.multi_reduction <maximumf>, %78, %cst_29 [1] : vector<128x8xf32> to vector<128xf32>
    %80 = vector.shape_cast %79 : vector<128xf32> to vector<128x1xf32>
    %81 = vector.broadcast %80 : vector<128x1xf32> to vector<128x8xf32>
    %82 = arith.subf %78, %81 : vector<128x8xf32>
    %83 = math.exp %82 : vector<128x8xf32>
    %cst_30 = arith.constant dense<0.000000e+00> : vector<128xf32>
    %84 = vector.multi_reduction <add>, %83, %cst_30 [1] : vector<128x8xf32> to vector<128xf32>
    %85 = vector.shape_cast %84 : vector<128xf32> to vector<128x1xf32>
    %86 = tpu.reciprocal %85 {approx = true} : vector<128x1xf32> -> vector<128x1xf32>
    %87 = vector.broadcast %86 : vector<128x1xf32> to vector<128x8xf32>
    %88 = arith.mulf %83, %87 : vector<128x8xf32>
    %cst_31 = arith.constant dense<0.000000e+00> : vector<128x128xf32>
    %89 = tpu.matmul %88, %51, %cst_31 {dimension_numbers = #tpu.dot_dimension_numbers<[1], [1], [0], [0], [0, 0, 1, 0], [], []>} : vector<128x8xf32>, vector<128x8xf32>, vector<128x128xf32> -> vector<128x128xf32>
    %90 = arith.mulf %89, %61 : vector<128x128xf32>
    %cst_32 = arith.constant dense<0.000000e+00> : vector<128x8xf32>
    %91 = tpu.matmul %90, %75, %cst_32 {dimension_numbers = #tpu.dot_dimension_numbers<[1], [0], [0], [1], [0, 0, 1, 1], [], []>} : vector<128x128xf32>, vector<128x8xf32>, vector<128x8xf32> -> vector<128x8xf32>
    %cst_33 = arith.constant dense<0.000000e+00> : vector<128x64xf32>
    %92 = tpu.matmul %91, %43, %cst_33 {dimension_numbers = #tpu.dot_dimension_numbers<[1], [1], [0], [0], [0, 0, 1, 0], [], []>} : vector<128x8xf32>, vector<64x8xf32>, vector<128x64xf32> -> vector<128x64xf32>
    %93 = arith.mulf %92, %35 : vector<128x64xf32>
    %cst_34 = arith.constant dense<0.000000e+00> : vector<16x64xf32>
    %94 = tpu.matmul %25, %93, %cst_34 {dimension_numbers = #tpu.dot_dimension_numbers<[1], [0], [0], [1], [0, 0, 1, 1], [], []>} : vector<16x128xf32>, vector<128x64xf32>, vector<16x64xf32> -> vector<16x64xf32>
    %c0_35 = arith.constant 0 : index
    %c0_36 = arith.constant 0 : index
    %95 = vector.load %arg2[%c0_35, %c0_36] : memref<64x64xf32, #tpu.memory_space<vmem>>, vector<64x64xf32>
    %cst_37 = arith.constant dense<0.000000e+00> : vector<16x64xf32>
    %96 = tpu.matmul %94, %95, %cst_37 {dimension_numbers = #tpu.dot_dimension_numbers<[1], [0], [0], [1], [0, 0, 1, 1], [], []>} : vector<16x64xf32>, vector<64x64xf32>, vector<16x64xf32> -> vector<16x64xf32>
    %97 = vector.broadcast %3 : vector<1x64xf32> to vector<16x64xf32>
    %98 = arith.addf %96, %97 : vector<16x64xf32>
    %99 = arith.addf %0, %98 : vector<16x64xf32>
    %cst_38 = arith.constant dense<0.000000e+00> : vector<16xf32>
    %100 = vector.multi_reduction <add>, %99, %cst_38 [1] : vector<16x64xf32> to vector<16xf32>
    %101 = vector.shape_cast %100 : vector<16xf32> to vector<16x1xf32>
    %cst_39 = arith.constant 6.400000e+01 : f32
    %102 = vector.broadcast %cst_39 : f32 to vector<16x1xf32>
    %103 = arith.divf %101, %102 : vector<16x1xf32>
    %104 = vector.broadcast %103 : vector<16x1xf32> to vector<16x64xf32>
    %105 = arith.subf %99, %104 : vector<16x64xf32>
    %106 = arith.mulf %105, %105 : vector<16x64xf32>
    %cst_40 = arith.constant dense<0.000000e+00> : vector<16xf32>
    %107 = vector.multi_reduction <add>, %106, %cst_40 [1] : vector<16x64xf32> to vector<16xf32>
    %108 = vector.shape_cast %107 : vector<16xf32> to vector<16x1xf32>
    %cst_41 = arith.constant 6.400000e+01 : f32
    %109 = vector.broadcast %cst_41 : f32 to vector<16x1xf32>
    %110 = arith.divf %108, %109 : vector<16x1xf32>
    %cst_42 = arith.constant 9.99999974E-6 : f32
    %111 = vector.broadcast %cst_42 : f32 to vector<16x1xf32>
    %112 = arith.addf %110, %111 : vector<16x1xf32>
    %113 = math.rsqrt %112 : vector<16x1xf32>
    %114 = vector.broadcast %113 : vector<16x1xf32> to vector<16x64xf32>
    %115 = arith.mulf %105, %114 : vector<16x64xf32>
    %116 = vector.broadcast %4 : vector<1x64xf32> to vector<16x64xf32>
    %117 = arith.mulf %115, %116 : vector<16x64xf32>
    %118 = vector.broadcast %5 : vector<1x64xf32> to vector<16x64xf32>
    %119 = arith.addf %117, %118 : vector<16x64xf32>
    %c0_43 = arith.constant 0 : index
    %c0_44 = arith.constant 0 : index
    %120 = vector.load %arg3[%c0_43, %c0_44] : memref<64x128xf32, #tpu.memory_space<vmem>>, vector<64x128xf32>
    %cst_45 = arith.constant dense<0.000000e+00> : vector<16x128xf32>
    %121 = tpu.matmul %119, %120, %cst_45 {dimension_numbers = #tpu.dot_dimension_numbers<[1], [0], [0], [1], [0, 0, 1, 1], [], []>} : vector<16x64xf32>, vector<64x128xf32>, vector<16x128xf32> -> vector<16x128xf32>
    %122 = vector.broadcast %6 : vector<1x128xf32> to vector<16x128xf32>
    %123 = arith.addf %121, %122 : vector<16x128xf32>
    %cst_46 = arith.constant 5.000000e-01 : f32
    %124 = vector.broadcast %cst_46 : f32 to vector<16x128xf32>
    %125 = arith.mulf %124, %123 : vector<16x128xf32>
    %cst_47 = arith.constant 0.707106769 : f32
    %126 = vector.broadcast %cst_47 : f32 to vector<16x128xf32>
    %127 = arith.mulf %123, %126 : vector<16x128xf32>
    %cst_48 = arith.constant 0.000000e+00 : f32
    %128 = vector.broadcast %cst_48 : f32 to vector<16x128xf32>
    %129 = arith.cmpf oge, %127, %128 : vector<16x128xf32>
    %cst_49 = arith.constant 1.000000e+00 : f32
    %cst_50 = arith.constant -1.000000e+00 : f32
    %130 = vector.broadcast %cst_49 : f32 to vector<16x128xf32>
    %131 = vector.broadcast %cst_50 : f32 to vector<16x128xf32>
    %132 = arith.select %129, %130, %131 : vector<16x128xi1>, vector<16x128xf32>
    %133 = math.absf %127 : vector<16x128xf32>
    %cst_51 = arith.constant 0.327591091 : f32
    %134 = vector.broadcast %cst_51 : f32 to vector<16x128xf32>
    %135 = arith.mulf %134, %133 : vector<16x128xf32>
    %cst_52 = arith.constant 1.000000e+00 : f32
    %136 = vector.broadcast %cst_52 : f32 to vector<16x128xf32>
    %137 = arith.addf %136, %135 : vector<16x128xf32>
    %138 = tpu.reciprocal %137 {approx = true} : vector<16x128xf32> -> vector<16x128xf32>
    %cst_53 = arith.constant 1.06140542 : f32
    %139 = vector.broadcast %cst_53 : f32 to vector<16x128xf32>
    %140 = arith.mulf %139, %138 : vector<16x128xf32>
    %cst_54 = arith.constant -1.45315206 : f32
    %141 = vector.broadcast %cst_54 : f32 to vector<16x128xf32>
    %142 = arith.addf %140, %141 : vector<16x128xf32>
    %143 = arith.mulf %142, %138 : vector<16x128xf32>
    %cst_55 = arith.constant 1.42141378 : f32
    %144 = vector.broadcast %cst_55 : f32 to vector<16x128xf32>
    %145 = arith.addf %143, %144 : vector<16x128xf32>
    %146 = arith.mulf %145, %138 : vector<16x128xf32>
    %cst_56 = arith.constant -0.284496725 : f32
    %147 = vector.broadcast %cst_56 : f32 to vector<16x128xf32>
    %148 = arith.addf %146, %147 : vector<16x128xf32>
    %149 = arith.mulf %148, %138 : vector<16x128xf32>
    %cst_57 = arith.constant 0.254829586 : f32
    %150 = vector.broadcast %cst_57 : f32 to vector<16x128xf32>
    %151 = arith.addf %149, %150 : vector<16x128xf32>
    %152 = arith.mulf %151, %138 : vector<16x128xf32>
    %153 = arith.mulf %133, %133 : vector<16x128xf32>
    %cst_58 = arith.constant 0.000000e+00 : f32
    %154 = vector.broadcast %cst_58 : f32 to vector<16x128xf32>
    %155 = arith.subf %154, %153 : vector<16x128xf32>
    %156 = math.exp %155 : vector<16x128xf32>
    %157 = arith.mulf %152, %156 : vector<16x128xf32>
    %cst_59 = arith.constant 1.000000e+00 : f32
    %158 = vector.broadcast %cst_59 : f32 to vector<16x128xf32>
    %159 = arith.subf %158, %157 : vector<16x128xf32>
    %160 = arith.mulf %132, %159 : vector<16x128xf32>
    %cst_60 = arith.constant 1.000000e+00 : f32
    %161 = vector.broadcast %cst_60 : f32 to vector<16x128xf32>
    %162 = arith.addf %161, %160 : vector<16x128xf32>
    %163 = arith.mulf %125, %162 : vector<16x128xf32>
    %c0_61 = arith.constant 0 : index
    %c0_62 = arith.constant 0 : index
    %164 = vector.load %arg4[%c0_61, %c0_62] : memref<128x64xf32, #tpu.memory_space<vmem>>, vector<128x64xf32>
    %cst_63 = arith.constant dense<0.000000e+00> : vector<16x64xf32>
    %165 = tpu.matmul %163, %164, %cst_63 {dimension_numbers = #tpu.dot_dimension_numbers<[1], [0], [0], [1], [0, 0, 1, 1], [], []>} : vector<16x128xf32>, vector<128x64xf32>, vector<16x64xf32> -> vector<16x64xf32>
    %166 = vector.broadcast %7 : vector<1x64xf32> to vector<16x64xf32>
    %167 = arith.addf %165, %166 : vector<16x64xf32>
    %168 = arith.addf %119, %167 : vector<16x64xf32>
    %cst_64 = arith.constant dense<0.000000e+00> : vector<16xf32>
    %169 = vector.multi_reduction <add>, %168, %cst_64 [1] : vector<16x64xf32> to vector<16xf32>
    %170 = vector.shape_cast %169 : vector<16xf32> to vector<16x1xf32>
    %cst_65 = arith.constant 6.400000e+01 : f32
    %171 = vector.broadcast %cst_65 : f32 to vector<16x1xf32>
    %172 = arith.divf %170, %171 : vector<16x1xf32>
    %173 = vector.broadcast %172 : vector<16x1xf32> to vector<16x64xf32>
    %174 = arith.subf %168, %173 : vector<16x64xf32>
    %175 = arith.mulf %174, %174 : vector<16x64xf32>
    %cst_66 = arith.constant dense<0.000000e+00> : vector<16xf32>
    %176 = vector.multi_reduction <add>, %175, %cst_66 [1] : vector<16x64xf32> to vector<16xf32>
    %177 = vector.shape_cast %176 : vector<16xf32> to vector<16x1xf32>
    %cst_67 = arith.constant 6.400000e+01 : f32
    %178 = vector.broadcast %cst_67 : f32 to vector<16x1xf32>
    %179 = arith.divf %177, %178 : vector<16x1xf32>
    %cst_68 = arith.constant 9.99999974E-6 : f32
    %180 = vector.broadcast %cst_68 : f32 to vector<16x1xf32>
    %181 = arith.addf %179, %180 : vector<16x1xf32>
    %182 = math.rsqrt %181 : vector<16x1xf32>
    %183 = vector.broadcast %182 : vector<16x1xf32> to vector<16x64xf32>
    %184 = arith.mulf %174, %183 : vector<16x64xf32>
    %185 = vector.broadcast %8 : vector<1x64xf32> to vector<16x64xf32>
    %186 = arith.mulf %184, %185 : vector<16x64xf32>
    %187 = vector.broadcast %9 : vector<1x64xf32> to vector<16x64xf32>
    %188 = arith.addf %186, %187 : vector<16x64xf32>
    %c0_69 = arith.constant 0 : index
    %c0_70 = arith.constant 0 : index
    %189 = vector.load %arg6[%c0_69, %c0_70] : memref<16x64xf32, #tpu.memory_space<vmem>>, vector<16x64xf32>
    tpu.vector_store %arg6[%c0_69, %c0_70], %188 {strides = array<i32>} : memref<16x64xf32, #tpu.memory_space<vmem>>, vector<16x64xf32>,
    return
  }
}

</mosaic_0001>

<bundles_post_ra>
// kernel: transformer_block_forward.1
= control target key start
LH: loop header
LB: loop body
LE: loop exit
PB: predicated region body
PF: predicated region fallthrough
CT: control target
= control target key end

     0   :  { %11 = vsyncpa [#allocation3], 0  ;;  %s3897_s0 = inlined_call_operand.hbm [shape: f32[16,64], index: 0, kind: input, shape index: {}]   ;;  %s3898_s1 = inlined_call_operand.vmem [shape: f32[64,192], index: 1, kind: input, shape index: {}]   ;;  %s3899_s2 = inlined_call_operand.vmem [shape: f32[64,64], index: 2, kind: input, shape index: {}]   ;;  %s3900_s3 = inlined_call_operand.hbm [shape: f32[64,128], index: 3, kind: input, shape index: {}]   ;;  %s3901_s4 = inlined_call_operand.vmem [shape: f32[128,64], index: 4, kind: input, shape index: {}]   ;;  %s3902_s5 = inlined_call_operand.hbm [shape: f32[8,192], index: 5, kind: input, shape index: {}]   ;;  %s3903_s6 = inlined_call_operand.hbm [shape: f32[16,64], index: 6, kind: output, shape index: {}]  }
   0x1   :  { %12 = vsyncpa [#allocation6], 0 }
   0x2   :  { %13 = vsyncpa [#allocation4], 0  ;;  %s35_s23 = sshll.u32 %s3900_s3, 4  ;;  %s2524_s24 = smov [#allocation5]   ;;  %s36_s23 = int_to_ptr.hbm [resolvable:$true] %s35_s23 }
   0x3   :  { %s37_s25 = sshll.u32 %s2524_s24, 4  ;;  %s18_s28 = sshll.u32 %s3897_s0, 4  ;;  %s38_s25 = int_to_ptr.vmem [resolvable:$true] %s37_s25  ;;  %s19_s28 = int_to_ptr.hbm [resolvable:$true] %s18_s28 }
   0x4   :  { %s2525_s29 = smov 128   ;;  %s2526_s30 = smov 8  }
   0x5   :  { %43 = dma.hbm_to_vmem [thread:$0]  %s36_s23, 1024, %s38_s25, [#allocation6], %s2525_s29, %s2525_s29, %s2526_s30  }
   0x6   :  { %s2527_s7 = smov [#allocation2]   ;;  %s51_s3 = sshll.u32 %s3902_s5, 4  ;;  %s52_s3 = int_to_ptr.hbm [resolvable:$true] %s51_s3 }
   0x7   :  { %s20_s8 = sshll.u32 %s2527_s7, 4  ;;  %s2528_s0 = smov [#allocation7]   ;;  %s21_s8 = int_to_ptr.vmem [resolvable:$true] %s20_s8 }
   0x8   :  { %26 = dma.hbm_to_vmem [thread:$0]  %s19_s28, 256, %s21_s8, [#allocation3], %s2525_s29, %s2525_s29, %s2526_s30  }
   0x9   :  { %s53_s11 = sshll.u32 %s2528_s0, 4  ;;  %s54_s11 = int_to_ptr.vmem [resolvable:$true] %s53_s11 }
   0xa   :  { %56 = dma.hbm_to_vmem [thread:$0]  %s52_s3, 256, %s54_s11, [#allocation6]  }
   0xb   :  { %2518 = dma.done.wait [#allocation3], 256  }
   0xc   :  { %2519 = vsyncadd [#allocation3], 4294967040 }
   0xd   :  { %2520 = dma.done.wait [#allocation6], 1280  }
   0xe   :  { %2521 = vsyncadd [#allocation6], 4294966016  ;;  %v271_v0 = vld [vmem:[%s3898_s1 + $0x70] sm:$0xff]  ;;  %v269_v1 = vld [vmem:[%s3898_s1 + $0x60] sm:$0xff]  ;;  %vm3938_vm0 = vcmask 523264   ;;  %v73_v10 = vlaneseq  ;;  %v3921_v20 = vmov 0.0  }
   0xf   :  { %288 = vmatpush.msra.mxu0 %v271_v0  ;;  %v267_v2 = vld [vmem:[%s3898_s1 + $0x50] sm:$0xff]  ;;  %v265_v3 = vld [vmem:[%s3898_s1 + $0x40] sm:$0xff]  ;;  %v2610_v9 = vld [vmem:[#allocation2 + $0x8] sm:$0xff]  ;;  %s2530_s3 = smov 64   ;;  %vm328_vm8 = vcmask 130048   ;;  %v3929_v59 = vmov 1.0  }
  0x10   :  { %v263_v4 = vld [vmem:[%s3898_s1 + $0x30] sm:$0xff]  ;;  %v261_v5 = vld [vmem:[%s3898_s1 + $0x20] sm:$0xff]  ;;  %v2614_v11 = vshrl.u32 %v73_v10, 7  ;;  %v2616_v12 = vand.u32 127, %v73_v10  ;;  %v272_v16 = vld [vmem:[%s3898_s1 + $0x78] sm:$0xff]  ;;  %v3974_v10 = vmov 0 }
  0x11   :  { %289 = vmatpush.msra.mxu0 %v269_v1  ;;  %v259_v6 = vld [vmem:[%s3898_s1 + $0x10] sm:$0xff]  ;;  %v257_v7 = vld [vmem:[%s3898_s1] sm:$0xff]  ;;  %v270_v17 = vld [vmem:[%s3898_s1 + $0x68] sm:$0xff]  ;;  %311 = vmatpush.msra.mxu1 %v272_v16  ;;  %s2090_s16 = sshll.u32 %s3903_s6, 4  ;;  %s2091_s16 = int_to_ptr.hbm [resolvable:$true] %s2090_s16 }
  0x12   :  { %v69_v8 = vld [vmem:[#allocation2] sm:$0xff]  ;;  %3951 = vst [vmem:[#allocation12_spill] sm:$0xff] %v2614_v11  ;;  %v2619_v13 = vadd.s32 8, %v2614_v11  ;;  %v2622_v14 = vshra.s32 %v2616_v12, 3  ;;  %v145_v15 = vand.u32 7, %v2614_v11  ;;  %v268_v19 = vld [vmem:[%s3898_s1 + $0x58] sm:$0xff] }
  0x13   :  { %290 = vmatpush.msra.mxu0 %v267_v2  ;;  %312 = vmatpush.msra.mxu1 %v270_v17  ;;  %v2647_v22 = vadd.s32 16, %v2614_v11  ;;  %v266_v23 = vld [vmem:[%s3898_s1 + $0x48] sm:$0xff]  ;;  %v2653_v24 = vadd.s32 24, %v2614_v11  ;;  %v264_v25 = vld [vmem:[%s3898_s1 + $0x38] sm:$0xff]  ;;  %v3918_v33 = vshra.s32 %v2614_v11, 3  ;;  %v2685_v36 = vadd.s32 32, %v2614_v11 }
  0x14   :  { %3952 = vst [vmem:[#allocation13_spill] sm:$0xff] %v2619_v13  ;;  %vm161_vm1 = vcmp.eq.s32.totalorder %v145_v15, %v2622_v14  ;;  %v146_v18 = vand.u32 7, %v2619_v13  ;;  %v262_v28 = vld [vmem:[%s3898_s1 + $0x28] sm:$0xff]  ;;  %v260_v32 = vld [vmem:[%s3898_s1 + $0x18] sm:$0xff]  ;;  %v3917_v43 = vshra.s32 %v2619_v13, 3  ;;  %v2718_v45 = vadd.s32 40, %v2614_v11 }
  0x15   :  { %291 = vmatpush.msra.mxu0 %v265_v3  ;;  %3953 = vst [vmem:[#allocation14_spill] sm:$0xff] %v2622_v14  ;;  %v2639_v21 = vsel %vm161_vm1, 1.0, %v3921_v20  ;;  %313 = vmatpush.msra.mxu1 %v268_v19  ;;  %v147_v26 = vand.u32 7, %v2647_v22  ;;  %v148_v29 = vand.u32 7, %v2653_v24  ;;  %v3915_v34 = vshra.s32 %v2653_v24, 3  ;;  %v258_v35 = vld [vmem:[%s3898_s1 + $0x8] sm:$0xff] }
  0x16   :  { %3954 = vst [vmem:[#allocation15_spill] sm:$0xff] %v2639_v21  ;;  %652 = vrot.lane.b32.xlu0 %v2639_v21, %s2530_s3  ;;  %vm162_vm2 = vcmp.eq.s32.totalorder %v146_v18, %v2622_v14  ;;  %v149_v37 = vand.u32 7, %v2685_v36  ;;  %vm108_vm5 = vcmp.eq.s32.totalorder %v3918_v33, %v2616_v12  ;;  %v3913_v44 = vshra.s32 %v2685_v36, 3  ;;  %v71_v19 = vld [vmem:[#allocation7] sm:$0xff] }
  0x17   :  { %292 = vmatpush.msra.mxu0 %v263_v4  ;;  %v2660_v27 = vsel %vm162_vm2, 1.0, %v3921_v20  ;;  %314 = vmatpush.msra.mxu1 %v266_v23  ;;  %vm163_vm3 = vcmp.eq.s32.totalorder %v147_v26, %v2622_v14  ;;  %vm164_vm4 = vcmp.eq.s32.totalorder %v148_v29, %v2622_v14  ;;  %vm111_vm6 = vcmp.eq.s32.totalorder %v3915_v34, %v2616_v12 }
  0x18   :  { %3955 = vst [vmem:[#allocation16_spill] sm:$0xff] %v2660_v27  ;;  %v2670_v30 = vsel %vm163_vm3, 1.0, %v3921_v20  ;;  %v2692_v38 = vsel %vm164_vm4, 1.0, %v3921_v20  ;;  %vm165_vm7 = vcmp.eq.s32.totalorder %v149_v37, %v2622_v14  ;;  %v2710_v41 = vsel %vm108_vm5, 1.0, %v3921_v20 }
  0x19   :  { %293 = vmatpush.msra.mxu0 %v261_v5  ;;  %315 = vmatpush.msra.mxu1 %v264_v25  ;;  %3956 = vst [vmem:[#allocation17_spill] sm:$0xff] %v2670_v30  ;;  %v2703_v39 = vsel %vm165_vm7, 1.0, %v3921_v20  ;;  %v2713_v42 = vsel %vm111_vm6, 1.0, %v3921_v20  ;;  %v150_v46 = vand.u32 7, %v2718_v45  ;;  %vm109_vm9 = vcmp.eq.s32.totalorder %v3917_v43, %v2616_v12 }
  0x1a   :  { %656 = vrot.lane.b32.xlu1 %v2670_v30, %s2530_s3  ;;  %3957 = vst [vmem:[#allocation18_spill] sm:$0xff] %v2692_v38  ;;  %660 = vrot.lane.b32.xlu2 %v2703_v39, %s2530_s3  ;;  %vm112_vm10 = vcmp.eq.s32.totalorder %v3913_v44, %v2616_v12  ;;  %v2740_v48 = vsel %vm109_vm9, 1.0, %v3921_v20  ;;  %v3916_v49 = vshra.s32 %v2647_v22, 3  ;;  %v3912_v51 = vshra.s32 %v2718_v45, 3 }
  0x1b   :  { %294 = vmatpush.msra.mxu0 %v259_v6  ;;  %316 = vmatpush.msra.mxu1 %v262_v28  ;;  %3958 = vst [vmem:[#allocation19_spill] sm:$0xff] %v2703_v39  ;;  %vm166_vm11 = vcmp.eq.s32.totalorder %v150_v46, %v2622_v14  ;;  %v2744_v50 = vsel %vm112_vm10, 1.0, %v3921_v20  ;;  %v2748_v52 = vadd.s32 48, %v2614_v11  ;;  %v2751_v53 = vadd.s32 56, %v2614_v11 }
  0x1c   :  { %v2735_v47 = vsel %vm166_vm11, 1.0, %v3921_v20  ;;  %vm110_vm12 = vcmp.eq.s32.totalorder %v3916_v49, %v2616_v12  ;;  %vm113_vm13 = vcmp.eq.s32.totalorder %v3912_v51, %v2616_v12  ;;  %vm2790_vm2 = vcmp.eq.s32.totalorder %v150_v46, %v2616_v12 }
  0x1d   :  { %295 = vmatpush.msra.mxu0 %v257_v7  ;;  %317 = vmatpush.msra.mxu1 %v260_v32  ;;  %3959 = vst [vmem:[#allocation20_spill] sm:$0xff] %v2735_v47  ;;  %v151_v54 = vand.u32 7, %v2748_v52  ;;  %v152_v55 = vand.u32 7, %v2751_v53  ;;  %v2795_v61 = vsel %vm110_vm12, 1.0, %v3921_v20  ;;  %v2798_v62 = vsel %vm113_vm13, 1.0, %v3921_v20 }
  0x1e   :  { %2104 = vmatmul.msk.f32.vlgmr.msra.gmra.mxu0 %vm3938_vm0, %v69_v8  ;;  %654 = vrot.lane.b32.xlu0 %v2660_v27, %s2530_s3  ;;  %v3910_v63 = vshra.s32 %v2748_v52, 3  ;;  %vm2808_vm3 = vcmp.eq.s32.totalorder %v149_v37, %v2616_v12  ;;  %vm2825_vm4 = vcmp.eq.s32.totalorder %v148_v29, %v2616_v12  ;;  %v3909_v3 = vshra.s32 %v2751_v53, 3 }
  0x1f   :  { %318 = vmatpush.msra.mxu1 %v258_v35  ;;  %vm167_vm14 = vcmp.eq.s32.totalorder %v151_v54, %v2622_v14  ;;  %vm2769_vm15 = vcmp.eq.s32.totalorder %v152_v55, %v2616_v12  ;;  %vm2774_vm1 = vcmp.eq.s32.totalorder %v151_v54, %v2616_v12  ;;  %v2854_v4 = vadd.s32 64, %v2614_v11 }
  0x20   :  { %2106 = vmatmul.msk.f32.vlgmr.msra.gmra.mxu1 %vm3938_vm0, %v69_v8  ;;  %v2779_v58 = vsel %vm167_vm14, 1.0, %v3921_v20  ;;  %vm114_vm5 = vcmp.eq.s32.totalorder %v3910_v63, %v2616_v12  ;;  %vm115_vm6 = vcmp.eq.s32.totalorder %v3909_v3, %v2616_v12  ;;  %vm2873_vm9 = vcmp.eq.s32.totalorder %v147_v26, %v2616_v12 }
  0x21   :  { %v2845_v2 = vsel %vm114_vm5, 1.0, %v3921_v20  ;;  %v2857_v5 = vsel %vm115_vm6, 1.0, %v3921_v20  ;;  %v3908_v6 = vshra.s32 %v2854_v4, 3  ;;  %v3970_v8 = vmov 0 }
  0x22   :  { %658 = vrot.lane.b32.xlu1 %v2692_v38, %s2530_s3  ;;  %662 = vrot.lane.b32.xlu2 %v2735_v47, %s2530_s3  ;;  %v3971_v8 = vsel %vm2873_vm9, 4294967295, %v3970_v8  ;;  %vm2886_vm10 = vcmp.eq.s32.totalorder %v146_v18, %v2616_v12  ;;  %vm2899_vm11 = vcmp.eq.s32.totalorder %v145_v15, %v2616_v12  ;;  %v2910_v16 = vadd.s32 72, %v2614_v11 }
  0x23   :  { %vm116_vm7 = vcmp.eq.s32.totalorder %v3908_v6, %v2616_v12  ;;  %v3975_v10 = vsel %vm2899_vm11, 4294967295, %v3974_v10  ;;  %v2913_v17 = vadd.s32 80, %v2614_v11  ;;  %v2925_v26 = vperm.slane %v71_v19, 0 }
  0x24   :  { %v2866_v7 = vsel %vm116_vm7, 1.0, %v3921_v20  ;;  %v3907_v18 = vshra.s32 %v2910_v16, 3  ;;  %v2931_v28 = vadd.s32 88, %v2614_v11  ;;  %vm168_vm5 = vcmp.eq.s32.totalorder %v152_v55, %v2622_v14 }
  0x25   :  { %v3904_v15 = vshra.s32 %v2913_v17, 3  ;;  %v2965_v55 = vsel %vm168_vm5, 1.0, %v3921_v20  ;;  %v3923_v3 = vand.u32 7, %v2910_v16 }
  0x26   :  { %2105 = vmatmul.msk.f32.gmra.mxu0 %vm3938_vm0, %v2610_v9  ;;  %vm117_vm12 = vcmp.eq.s32.totalorder %v3907_v18, %v2616_v12  ;;  %v3906_v37 = vshra.s32 %v2931_v28, 3 }
  0x27   :  { %v2921_v23 = vsel %vm117_vm12, 1.0, %v3921_v20  ;;  %vm118_vm13 = vcmp.eq.s32.totalorder %v3904_v15, %v2616_v12 }
  0x28   :  { %2107 = vmatmul.msk.f32.gmra.mxu1 %vm3938_vm0, %v2610_v9  ;;  %v3972_v9 = vmov 0  ;;  %v2934_v32 = vsel %vm118_vm13, 1.0, %v3921_v20  ;;  %vm119_vm14 = vcmp.eq.s32.totalorder %v3906_v37, %v2616_v12  ;;  %vm170_vm13 = vcmp.eq.s32.totalorder %v3923_v3, %v2622_v14 }
  0x29   :  { %v3973_v9 = vsel %vm2886_vm10, 4294967295, %v3972_v9 }
  0x2a   :  { %664 = vrot.lane.b32.xlu1 %v2779_v58, %s2530_s3 }
  0x74   :  { %v661_v63 = vpop.permute.xlu2 %660 }
  0x88   :  { %v653_v29 = vpop.permute.xlu0 %652 }
  0x8c   :  { %v657_v19 = vpop.permute.xlu1 %656 }
  0x9b   :  { %v297_v31 = vpop.f32.mrf.mxu0 }
  0x9d   :  { %v320_v25 = vpop.f32.mrf.mxu1 }
  0xa3   :  { %v300_v40 = vpop.f32.mrf.mxu0 }
  0xa4   :  { %391 = vmatpush.msrb.mxu0 %v300_v40  ;;  %2322 = vmatpush.msra.mxu2 %v300_v40 }
  0xa5   :  { %v323_v40 = vpop.f32.mrf.mxu1 }
  0xa6   :  { %392 = vmatpush.msrb.mxu0 %v297_v31  ;;  %2323 = vmatpush.msra.mxu2 %v297_v31 }
  0xa7   :  { %2108 = vmatmul.msk.f32.vlgmr.msrb.gmra.mxu0 %vm328_vm8, %v2710_v41  ;;  %2111 = vmatmul.msk.f32.vlgmr.msra.gmra.mxu2 %vm328_vm8, %v2713_v42 }
  0xa8   :  { %2140 = vmatpush.msk.msra.mxu0 %vm2769_vm15, %v3929_v59  ;;  %2188 = vmatpush.msk.msrb.mxu2 %vm2769_vm15, %v3929_v59 }
  0xa9   :  { %456 = vmatpush.msrb.mxu1 %v323_v40  ;;  %2324 = vmatpush.msra.mxu3 %v323_v40  ;;  %v2957_v40 = vsel %vm119_vm14, 1.0, %v3921_v20 }
  0xaa   :  { %2141 = vmatpush.msk.msra.mxu0 %vm2774_vm1, %v3929_v59  ;;  %2189 = vmatpush.msk.msrb.mxu2 %vm2774_vm1, %v3929_v59 }
  0xab   :  { %457 = vmatpush.msrb.mxu1 %v320_v25  ;;  %2325 = vmatpush.msra.mxu3 %v320_v25 }
  0xac   :  { %2142 = vmatpush.msk.msra.mxu0 %vm2790_vm2, %v3929_v59  ;;  %2190 = vmatpush.msk.msrb.mxu2 %vm2790_vm2, %v3929_v59 }
  0xad   :  { %2124 = vmatmul.msk.f32.vlgmr.msrb.gmra.mxu1 %vm328_vm8, %v2710_v41  ;;  %2127 = vmatmul.msk.f32.vlgmr.msra.gmra.mxu3 %vm328_vm8, %v2713_v42 }
  0xae   :  { %2143 = vmatpush.msk.msra.mxu0 %vm2808_vm3, %v3929_v59  ;;  %2191 = vmatpush.msk.msrb.mxu2 %vm2808_vm3, %v3929_v59 }
  0xaf   :  { %2109 = vmatmul.msk.f32.gmra.mxu0 %vm328_vm8, %v2740_v48  ;;  %2112 = vmatmul.msk.f32.gmra.mxu2 %vm328_vm8, %v2744_v50 }
  0xb0   :  { %2144 = vmatpush.msk.msra.mxu0 %vm2825_vm4, %v3929_v59  ;;  %2192 = vmatpush.msk.msrb.mxu2 %vm2825_vm4, %v3929_v59 }
  0xb1   :  { %2164 = vmatpush.msk.msra.mxu1 %vm2769_vm15, %v3929_v59 }
  0xb2   :  { %2145 = vmatpush.msk.msra.mxu0 %vm2873_vm9, %v3929_v59  ;;  %2193 = vmatpush.msk.msrb.mxu2 %vm2873_vm9, %v3929_v59 }
  0xb3   :  { %2165 = vmatpush.msk.msra.mxu1 %vm2774_vm1, %v3929_v59 }
  0xb4   :  { %2146 = vmatpush.msk.msra.mxu0 %vm2886_vm10, %v3929_v59  ;;  %2194 = vmatpush.msk.msrb.mxu2 %vm2886_vm10, %v3929_v59 }
  0xb5   :  { %2166 = vmatpush.msk.msra.mxu1 %vm2790_vm2, %v3929_v59  ;;  %2128 = vmatmul.msk.f32.gmra.mxu3 %vm328_vm8, %v2744_v50 }
  0xb6   :  { %2147 = vmatpush.msk.msra.mxu0 %vm2899_vm11, %v3929_v59  ;;  %2195 = vmatpush.msk.msrb.mxu2 %vm2899_vm11, %v3929_v59 }
  0xb7   :  { %2110 = vmatmul.msk.f32.gmra.mxu0 %vm328_vm8, %v2795_v61  ;;  %2113 = vmatmul.msk.f32.gmra.mxu2 %vm328_vm8, %v2798_v62 }
  0xb8   :  { %2167 = vmatpush.msk.msra.mxu1 %vm2808_vm3, %v3929_v59 }
  0xb9   :  { %2125 = vmatmul.msk.f32.gmra.mxu1 %vm328_vm8, %v2740_v48 }
  0xba   :  { %2168 = vmatpush.msk.msra.mxu1 %vm2825_vm4, %v3929_v59 }
  0xbc   :  { %2169 = vmatpush.msk.msra.mxu1 %vm2873_vm9, %v3929_v59 }
  0xbd   :  { %2129 = vmatmul.msk.f32.gmra.mxu3 %vm328_vm8, %v2798_v62 }
  0xbe   :  { %2170 = vmatpush.msk.msra.mxu1 %vm2886_vm10, %v3929_v59 }
  0xbf   :  { %2114 = vmatmul.msk.f32.gmra.mxu2 %vm328_vm8, %v2845_v2 }
  0xc0   :  { %2171 = vmatpush.msk.msra.mxu1 %vm2899_vm11, %v3929_v59 }
  0xc1   :  { %2126 = vmatmul.msk.f32.gmra.mxu1 %vm328_vm8, %v2795_v61  ;;  %v3049_v61 = vsel %vm170_vm13, 1.0, %v3921_v20 }
  0xc5   :  { %2130 = vmatmul.msk.f32.gmra.mxu3 %vm328_vm8, %v2845_v2 }
  0xc7   :  { %2115 = vmatmul.msk.f32.gmra.mxu2 %vm328_vm8, %v2857_v5 }
  0xcd   :  { %2131 = vmatmul.msk.f32.gmra.mxu3 %vm328_vm8, %v2857_v5 }
  0xcf   :  { %2116 = vmatmul.msk.f32.gmra.mxu2 %vm328_vm8, %v2866_v7 }
  0xd5   :  { %2132 = vmatmul.msk.f32.gmra.mxu3 %vm328_vm8, %v2866_v7 }
  0xd7   :  { %2117 = vmatmul.msk.f32.gmra.mxu2 %vm328_vm8, %v2921_v23 }
  0xdd   :  { %2133 = vmatmul.msk.f32.gmra.mxu3 %vm328_vm8, %v2921_v23 }
  0xdf   :  { %2118 = vmatmul.msk.f32.gmra.mxu2 %vm328_vm8, %v2934_v32 }
  0xe5   :  { %2134 = vmatmul.msk.f32.gmra.mxu3 %vm328_vm8, %v2934_v32 }
  0xe7   :  { %2119 = vmatmul.msk.f32.gmra.mxu2 %vm328_vm8, %v2957_v40 }
  0xed   :  { %2135 = vmatmul.msk.f32.gmra.mxu3 %vm328_vm8, %v2957_v40 }
 0x124   :  { %v394_v31 = vpop.f32.mrf.mxu0 }
 0x125   :  { %v395_v35 = vadd.f32 %v394_v31, %v2925_v26  ;;  %v2947_v31 = vadd.s32 96, %v2614_v11 }
 0x127   :  { %v507_v46 = vmul.f32 %v395_v35, %v2639_v21  ;;  %v700_v54 = vmul.f32 %v653_v29, %v395_v35  ;;  %v655_v35 = vpop.permute.xlu0 %654 }
 0x129   :  { %732 = vrot.lane.b32.xlu0 %v700_v54, %s2530_s3  ;;  %2148 = vmatmul.msk.f32.vlgmr.msra.gmra.mxu0 %vm3938_vm0, %v507_v46  ;;  %v3905_v46 = vshra.s32 %v2947_v31, 3  ;;  %v3919_v54 = vand.u32 7, %v2854_v4 }
 0x12a   :  { %v403_v15 = vpop.f32.mrf.mxu2 }
 0x12b   :  { %vm120_vm6 = vcmp.eq.s32.totalorder %v3905_v46, %v2616_v12  ;;  %vm169_vm7 = vcmp.eq.s32.totalorder %v3919_v54, %v2622_v14  ;;  %v3926_v54 = vand.u32 7, %v2947_v31 }
 0x12c   :  { %v397_v29 = vpop.f32.mrf.mxu0  ;;  %v3007_v18 = vsel %vm169_vm7, 1.0, %v3921_v20 }
 0x12d   :  { %v398_v25 = vadd.f32 %v397_v29, %v2925_v26  ;;  %v2984_v29 = vadd.s32 104, %v2614_v11 }
 0x12f   :  { %v508_v41 = vmul.f32 %v398_v25, %v2660_v27  ;;  %v701_v42 = vmul.f32 %v655_v35, %v398_v25  ;;  %v404_v35 = vadd.f32 %v403_v15, %v2925_v26  ;;  %v3911_v37 = vshra.s32 %v2984_v29, 3 }
 0x131   :  { %734 = vrot.lane.b32.xlu2 %v701_v42, %s2530_s3  ;;  %666 = vrot.lane.b32.xlu0 %v2965_v55, %s2530_s3  ;;  %v659_v42 = vpop.permute.xlu1 %658  ;;  %vm121_vm12 = vcmp.eq.s32.totalorder %v3911_v37, %v2616_v12  ;;  %v3925_v37 = vand.u32 7, %v2931_v28 }
 0x132   :  { %2149 = vmatmul.msk.f32.gmra.mxu0 %vm3938_vm0, %v508_v41  ;;  %v406_v25 = vpop.f32.mrf.mxu2  ;;  %v2999_v41 = vsel %vm120_vm6, 1.0, %v3921_v20  ;;  %v703_v6 = vmul.f32 %v659_v42, %v404_v35 }
 0x133   :  { %2120 = vmatmul.msk.f32.gmra.mxu2 %vm328_vm8, %v2999_v41  ;;  %v407_v42 = vadd.f32 %v406_v25, %v2925_v26  ;;  %v137_v25 = vsel %vm121_vm12, 1.0, %v3921_v20  ;;  %vm172_vm6 = vcmp.eq.s32.totalorder %v3925_v37, %v2622_v14  ;;  %vm173_vm12 = vcmp.eq.s32.totalorder %v3926_v54, %v2622_v14  ;;  %2136 = vmatmul.msk.f32.gmra.mxu3 %vm328_vm8, %v2999_v41 }
 0x134   :  { %v400_v46 = vpop.f32.mrf.mxu0  ;;  %v3079_v43 = vsel %vm172_vm6, 1.0, %v3921_v20  ;;  %v3099_v2 = vsel %vm173_vm12, 1.0, %v3921_v20 }
 0x135   :  { %v401_v15 = vadd.f32 %v400_v46, %v2925_v26  ;;  %v3924_v46 = vand.u32 7, %v2913_v17 }
 0x137   :  { %v509_v48 = vmul.f32 %v401_v15, %v2670_v30  ;;  %v702_v50 = vmul.f32 %v657_v19, %v401_v15  ;;  %v3028_v19 = vadd.s32 112, %v2614_v11  ;;  %vm171_vm14 = vcmp.eq.s32.totalorder %v3924_v46, %v2622_v14 }
 0x138   :  { %v3052_v62 = vsel %vm171_vm14, 1.0, %v3921_v20 }
 0x139   :  { %668 = vrot.lane.b32.xlu2 %v3007_v18, %s2530_s3  ;;  %736 = vrot.lane.b32.xlu1 %v702_v50, %s2530_s3  ;;  %v510_v50 = vmul.f32 %v404_v35, %v2692_v38  ;;  %v663_v35 = vpop.permute.xlu2 %662 }
 0x13a   :  { %738 = vrot.lane.b32.xlu0 %v703_v6, %s2530_s3  ;;  %v409_v15 = vpop.f32.mrf.mxu2  ;;  %2150 = vmatmul.msk.f32.gmra.mxu0 %vm3938_vm0, %v509_v48  ;;  %v704_v6 = vmul.f32 %v661_v63, %v407_v42  ;;  %v3914_v48 = vshra.s32 %v3028_v19, 3  ;;  %v3064_v63 = vadd.s32 120, %v2614_v11 }
 0x13b   :  { %2121 = vmatmul.msk.f32.gmra.mxu2 %vm328_vm8, %v137_v25  ;;  %v410_v51 = vadd.f32 %v409_v15, %v2925_v26  ;;  %2137 = vmatmul.msk.f32.gmra.mxu3 %vm328_vm8, %v137_v25 }
 0x13c   :  { %vm122_vm5 = vcmp.eq.s32.totalorder %v3914_v48, %v2616_v12  ;;  %v3920_v49 = vshra.s32 %v3064_v63, 3 }
 0x13d   :  { %v138_v48 = vsel %vm122_vm5, 1.0, %v3921_v20  ;;  %v705_v34 = vmul.f32 %v663_v35, %v410_v51  ;;  %v3927_v35 = vand.u32 7, %v2984_v29  ;;  %vm3939_vm5 = vcmask 64512  }
 0x13e   :  { %vm123_vm7 = vcmp.eq.s32.totalorder %v3920_v49, %v2616_v12 }
 0x13f   :  { %vm174_vm13 = vcmp.eq.s32.totalorder %v3927_v35, %v2622_v14 }
 0x140   :  { %v3124_v23 = vsel %vm174_vm13, 1.0, %v3921_v20 }
 0x141   :  { %670 = vrot.lane.b32.xlu1 %v3049_v61, %s2530_s3  ;;  %740 = vrot.lane.b32.xlu2 %v704_v6, %s2530_s3  ;;  %v665_v6 = vpop.permute.xlu1 %664 }
 0x142   :  { %2151 = vmatmul.msk.f32.gmra.mxu0 %vm3938_vm0, %v510_v50  ;;  %672 = vrot.lane.b32.xlu0 %v3052_v62, %s2530_s3  ;;  %v412_v44 = vpop.f32.mrf.mxu2  ;;  %v511_v50 = vmul.f32 %v407_v42, %v2703_v39 }
 0x143   :  { %v413_v15 = vadd.f32 %v412_v44, %v2925_v26  ;;  %2122 = vmatmul.msk.f32.gmra.mxu2 %vm328_vm8, %v138_v48  ;;  %v512_v44 = vmul.f32 %v410_v51, %v2735_v47  ;;  %2138 = vmatmul.msk.f32.gmra.mxu3 %vm328_vm8, %v138_v48  ;;  %v72_v48 = vld [vmem:[#allocation7 + $0x8] sm:$0xff] }
 0x145   :  { %v706_v33 = vmul.f32 %v665_v6, %v413_v15 }
 0x149   :  { %742 = vrot.lane.b32.xlu1 %v705_v34, %s2530_s3  ;;  %674 = vrot.lane.b32.xlu2 %v3079_v43, %s2530_s3  ;;  %v139_v34 = vsel %vm123_vm7, 1.0, %v3921_v20 }
 0x14a   :  { %2152 = vmatmul.msk.f32.gmra.mxu0 %vm3938_vm0, %v511_v50  ;;  %744 = vrot.lane.b32.xlu0 %v706_v33, %s2530_s3  ;;  %v513_v33 = vmul.f32 %v413_v15, %v2779_v58  ;;  %v415_v5 = vpop.f32.mrf.mxu2 }
 0x14b   :  { %2123 = vmatmul.msk.f32.gmra.mxu2 %vm328_vm8, %v139_v34  ;;  %v416_v51 = vadd.f32 %v415_v5, %v2925_v26  ;;  %2139 = vmatmul.msk.f32.gmra.mxu3 %vm328_vm8, %v139_v34 }
 0x14d   :  { %v514_v42 = vmul.f32 %v416_v51, %v2965_v55 }
 0x151   :  { %676 = vrot.lane.b32.xlu1 %v3099_v2, %s2530_s3 }
 0x152   :  { %2153 = vmatmul.msk.f32.gmra.mxu0 %vm3938_vm0, %v512_v44  ;;  %v418_v7 = vpop.f32.mrf.mxu2  ;;  %678 = vrot.lane.b32.xlu0 %v3124_v23, %s2530_s3  ;;  %v3931_v44 = vand.u32 7, %v3064_v63 }
 0x153   :  { %v419_v15 = vadd.f32 %v418_v7, %v2925_v26  ;;  %v3928_v7 = vand.u32 7, %v3028_v19 }
 0x154   :  { %vm176_vm14 = vcmp.eq.s32.totalorder %v3931_v44, %v2622_v14 }
 0x155   :  { %v515_v6 = vmul.f32 %v419_v15, %v3007_v18  ;;  %v3141_v41 = vsel %vm176_vm14, 1.0, %v3921_v20  ;;  %vm175_vm8 = vcmp.eq.s32.totalorder %v3928_v7, %v2622_v14 }
 0x15a   :  { %2154 = vmatmul.msk.f32.gmra.mxu0 %vm3938_vm0, %v513_v33  ;;  %v421_v25 = vpop.f32.mrf.mxu2 }
 0x15b   :  { %v422_v5 = vadd.f32 %v421_v25, %v2925_v26 }
 0x162   :  { %2155 = vmatmul.msk.f32.gmra.mxu0 %vm3938_vm0, %v514_v42 }
 0x16a   :  { %2156 = vmatmul.msk.f32.gmra.mxu0 %vm3938_vm0, %v515_v6  ;;  %v3150_v6 = vperm.slane %v72_v48, 0 }
 0x18b   :  { %v735_v32 = vpop.permute.xlu2 %734 }
 0x193   :  { %v669_v40 = vpop.permute.xlu2 %668 }
 0x194   :  { %v708_v50 = vmul.f32 %v669_v40, %v419_v15  ;;  %v516_v15 = vmul.f32 %v422_v5, %v3049_v61  ;;  %v459_v40 = vpop.f32.mrf.mxu1 }
 0x196   :  { %748 = vrot.lane.b32.xlu1 %v708_v50, %s2530_s3  ;;  %2157 = vmatmul.msk.f32.gmra.mxu0 %vm3938_vm0, %v516_v15  ;;  %v460_v50 = vadd.f32 %v459_v40, %v3150_v6 }
 0x198   :  { %v861_v48 = vmul.f32 %v460_v50, %v2639_v21 }
 0x19a   :  { %2196 = vmatmul.msk.f32.vlgmr.msrb.gmra.mxu2 %vm3938_vm0, %v861_v48 }
 0x19b   :  { %v733_v33 = vpop.permute.xlu0 %732  ;;  %v741_v15 = vpop.permute.xlu2 %740 }
 0x19c   :  { %2172 = vmatmul.msk.f32.vlgmr.msra.gmra.mxu1 %vm3938_vm0, %v733_v33  ;;  %v462_v40 = vpop.f32.mrf.mxu1 }
 0x19d   :  { %v463_v49 = vadd.f32 %v462_v40, %v3150_v6 }
 0x19e   :  { %682 = vrot.lane.b32.xlu1 %v3141_v41, %s2530_s3 }
 0x1a3   :  { %v667_v34 = vpop.permute.xlu0 %666 }
 0x1a4   :  { %v707_v42 = vmul.f32 %v667_v34, %v416_v51  ;;  %2173 = vmatmul.msk.f32.gmra.mxu1 %vm3938_vm0, %v735_v32  ;;  %v424_v51 = vpop.f32.mrf.mxu2  ;;  %v3159_v32 = vsel %vm175_vm8, 1.0, %v3921_v20  ;;  %v465_v40 = vpop.f32.mrf.mxu1 }
 0x1a5   :  { %v425_v25 = vadd.f32 %v424_v51, %v2925_v26 }
 0x1a6   :  { %746 = vrot.lane.b32.xlu2 %v707_v42, %s2530_s3 }
 0x1a7   :  { %v517_v42 = vmul.f32 %v425_v25, %v3052_v62 }
 0x1a9   :  { %2158 = vmatmul.msk.f32.gmra.mxu0 %vm3938_vm0, %v517_v42  ;;  %v675_v42 = vpop.permute.xlu2 %674 }
 0x1ab   :  { %v737_v33 = vpop.permute.xlu1 %736 }
 0x1ac   :  { %2174 = vmatmul.msk.f32.gmra.mxu1 %vm3938_vm0, %v737_v33  ;;  %v739_v34 = vpop.permute.xlu0 %738  ;;  %v427_v20 = vpop.f32.mrf.mxu2  ;;  %v862_v33 = vmul.f32 %v463_v49, %v2660_v27  ;;  %v466_v49 = vadd.f32 %v465_v40, %v3150_v6 }
 0x1ad   :  { %v428_v50 = vadd.f32 %v427_v20, %v2925_v26  ;;  %v468_v20 = vpop.f32.mrf.mxu3 }
 0x1ae   :  { %680 = vrot.lane.b32.xlu2 %v3159_v32, %s2530_s3  ;;  %2197 = vmatmul.msk.f32.gmra.mxu2 %vm3938_vm0, %v862_v33 }
 0x1af   :  { %v518_v48 = vmul.f32 %v428_v50, %v3079_v43 }
 0x1b1   :  { %2159 = vmatmul.msk.f32.gmra.mxu0 %vm3938_vm0, %v518_v48 }
 0x1b3   :  { %v671_v51 = vpop.permute.xlu1 %670 }
 0x1b4   :  { %v709_v3 = vmul.f32 %v671_v51, %v422_v5  ;;  %2175 = vmatmul.msk.f32.gmra.mxu1 %vm3938_vm0, %v739_v34  ;;  %v673_v46 = vpop.permute.xlu0 %672  ;;  %v711_v5 = vmul.f32 %v675_v42, %v428_v50 }
 0x1b5   :  { %v710_v37 = vmul.f32 %v673_v46, %v425_v25  ;;  %v863_v46 = vmul.f32 %v466_v49, %v2670_v30  ;;  %v471_v50 = vpop.f32.mrf.mxu3 }
 0x1b6   :  { %750 = vrot.lane.b32.xlu0 %v709_v3, %s2530_s3  ;;  %v430_v51 = vpop.f32.mrf.mxu2 }
 0x1b7   :  { %752 = vrot.lane.b32.xlu2 %v710_v37, %s2530_s3  ;;  %v431_v54 = vadd.f32 %v430_v51, %v2925_v26  ;;  %2198 = vmatmul.msk.f32.gmra.mxu2 %vm3938_vm0, %v863_v46  ;;  %v469_v37 = vadd.f32 %v468_v20, %v3150_v6 }
 0x1b9   :  { %v519_v3 = vmul.f32 %v431_v54, %v3099_v2  ;;  %v864_v25 = vmul.f32 %v469_v37, %v2692_v38 }
 0x1bb   :  { %v743_v34 = vpop.permute.xlu1 %742  ;;  %2160 = vmatmul.msk.f32.gmra.mxu0 %vm3938_vm0, %v519_v3 }
 0x1bc   :  { %2176 = vmatmul.msk.f32.gmra.mxu1 %vm3938_vm0, %v741_v15  ;;  %v472_v15 = vadd.f32 %v471_v50, %v3150_v6  ;;  %v745_v49 = vpop.permute.xlu0 %744 }
 0x1be   :  { %754 = vrot.lane.b32.xlu0 %v711_v5, %s2530_s3  ;;  %v433_v33 = vpop.f32.mrf.mxu2  ;;  %v865_v5 = vmul.f32 %v472_v15, %v2703_v39 }
 0x1bf   :  { %v434_v42 = vadd.f32 %v433_v33, %v2925_v26  ;;  %2199 = vmatmul.msk.f32.gmra.mxu2 %vm3938_vm0, %v864_v25 }
 0x1c1   :  { %v520_v20 = vmul.f32 %v434_v42, %v3124_v23 }
 0x1c3   :  { %v677_v48 = vpop.permute.xlu1 %676  ;;  %2161 = vmatmul.msk.f32.gmra.mxu0 %vm3938_vm0, %v520_v20 }
 0x1c4   :  { %v712_v40 = vmul.f32 %v677_v48, %v431_v54  ;;  %2177 = vmatmul.msk.f32.gmra.mxu1 %vm3938_vm0, %v743_v34  ;;  %v679_v54 = vpop.permute.xlu0 %678  ;;  %v474_v34 = vpop.f32.mrf.mxu3 }
 0x1c5   :  { %v713_v51 = vmul.f32 %v679_v54, %v434_v42  ;;  %v475_v3 = vadd.f32 %v474_v34, %v3150_v6 }
 0x1c6   :  { %756 = vrot.lane.b32.xlu1 %v712_v40, %s2530_s3  ;;  %v436_v46 = vpop.f32.mrf.mxu2 }
 0x1c7   :  { %2200 = vmatmul.msk.f32.gmra.mxu2 %vm3938_vm0, %v865_v5  ;;  %v437_v37 = vadd.f32 %v436_v46, %v2925_v26  ;;  %758 = vrot.lane.b32.xlu2 %v713_v51, %s2530_s3  ;;  %v866_v25 = vmul.f32 %v475_v3, %v2735_v47 }
 0x1c9   :  { %v521_v50 = vmul.f32 %v437_v37, %v3159_v32 }
 0x1cb   :  { %2162 = vmatmul.msk.f32.gmra.mxu0 %vm3938_vm0, %v521_v50 }
 0x1cc   :  { %2178 = vmatmul.msk.f32.gmra.mxu1 %vm3938_vm0, %v745_v49  ;;  %v477_v33 = vpop.f32.mrf.mxu3 }
 0x1cd   :  { %v478_v48 = vadd.f32 %v477_v33, %v3150_v6 }
 0x1ce   :  { %v439_v42 = vpop.f32.mrf.mxu2 }
 0x1cf   :  { %2201 = vmatmul.msk.f32.gmra.mxu2 %vm3938_vm0, %v866_v25  ;;  %v440_v40 = vadd.f32 %v439_v42, %v2925_v26  ;;  %v867_v15 = vmul.f32 %v478_v48, %v2779_v58 }
 0x1d1   :  { %v522_v20 = vmul.f32 %v440_v40, %v3141_v41 }
 0x1d3   :  { %2163 = vmatmul.msk.f32.gmra.mxu0 %vm3938_vm0, %v522_v20 }
 0x1d4   :  { %v480_v49 = vpop.f32.mrf.mxu3 }
 0x1d5   :  { %v481_v5 = vadd.f32 %v480_v49, %v3150_v6 }
 0x1d7   :  { %2202 = vmatmul.msk.f32.gmra.mxu2 %vm3938_vm0, %v867_v15  ;;  %v868_v54 = vmul.f32 %v481_v5, %v2965_v55 }
 0x1dc   :  { %v483_v51 = vpop.f32.mrf.mxu3 }
 0x1dd   :  { %v484_v34 = vadd.f32 %v483_v51, %v3150_v6 }
 0x1df   :  { %2203 = vmatmul.msk.f32.gmra.mxu2 %vm3938_vm0, %v868_v54  ;;  %v869_v26 = vmul.f32 %v484_v34, %v3007_v18 }
 0x1e4   :  { %v486_v3 = vpop.f32.mrf.mxu3 }
 0x1e5   :  { %v487_v25 = vadd.f32 %v486_v3, %v3150_v6 }
 0x1e7   :  { %2204 = vmatmul.msk.f32.gmra.mxu2 %vm3938_vm0, %v869_v26  ;;  %v870_v50 = vmul.f32 %v487_v25, %v3049_v61 }
 0x1ec   :  { %v489_v15 = vpop.f32.mrf.mxu3 }
 0x1ed   :  { %v490_v20 = vadd.f32 %v489_v15, %v3150_v6 }
 0x1ef   :  { %2205 = vmatmul.msk.f32.gmra.mxu2 %vm3938_vm0, %v870_v50  ;;  %v871_v49 = vmul.f32 %v490_v20, %v3052_v62 }
 0x1f4   :  { %v492_v51 = vpop.f32.mrf.mxu3 }
 0x1f5   :  { %v493_v34 = vadd.f32 %v492_v51, %v3150_v6 }
 0x1f7   :  { %2206 = vmatmul.msk.f32.gmra.mxu2 %vm3938_vm0, %v871_v49 }
 0x1fc   :  { %v495_v26 = vpop.f32.mrf.mxu3 }
 0x200   :  { %v747_v46 = vpop.permute.xlu2 %746 }
 0x201   :  { %2179 = vmatmul.msk.f32.gmra.mxu1 %vm3938_vm0, %v747_v46  ;;  %v496_v46 = vadd.f32 %v495_v26, %v3150_v6 }
 0x203   :  { %v873_v3 = vmul.f32 %v496_v46, %v3099_v2 }
 0x204   :  { %v498_v25 = vpop.f32.mrf.mxu3 }
 0x205   :  { %v499_v50 = vadd.f32 %v498_v25, %v3150_v6 }
 0x208   :  { %v749_v33 = vpop.permute.xlu1 %748  ;;  %v681_v48 = vpop.permute.xlu2 %680 }
 0x209   :  { %v714_v42 = vmul.f32 %v681_v48, %v437_v37  ;;  %2180 = vmatmul.msk.f32.gmra.mxu1 %vm3938_vm0, %v749_v33  ;;  %v872_v37 = vmul.f32 %v493_v34, %v3079_v43 }
 0x20b   :  { %760 = vrot.lane.b32.xlu0 %v714_v42, %s2530_s3  ;;  %2207 = vmatmul.msk.f32.gmra.mxu2 %vm3938_vm0, %v872_v37 }
 0x20c   :  { %v501_v48 = vpop.f32.mrf.mxu3 }
 0x20d   :  { %v502_v42 = vadd.f32 %v501_v48, %v3150_v6 }
 0x20f   :  { %v875_v20 = vmul.f32 %v502_v42, %v3159_v32 }
 0x210   :  { %v683_v5 = vpop.permute.xlu1 %682 }
 0x211   :  { %v715_v54 = vmul.f32 %v683_v5, %v440_v40  ;;  %v874_v40 = vmul.f32 %v499_v50, %v3124_v23  ;;  %v753_v15 = vpop.permute.xlu2 %752 }
 0x213   :  { %762 = vrot.lane.b32.xlu1 %v715_v54, %s2530_s3  ;;  %2208 = vmatmul.msk.f32.gmra.mxu2 %vm3938_vm0, %v873_v3 }
 0x214   :  { %v504_v49 = vpop.f32.mrf.mxu3 }
 0x215   :  { %v505_v5 = vadd.f32 %v504_v49, %v3150_v6 }
 0x217   :  { %v876_v51 = vmul.f32 %v505_v5, %v3141_v41 }
 0x21b   :  { %2209 = vmatmul.msk.f32.gmra.mxu2 %vm3938_vm0, %v874_v40 }
 0x21d   :  { %v942_v34 = vpop.f32.mrf.mxu2 }
 0x221   :  { %v759_v46 = vpop.permute.xlu2 %758 }
 0x223   :  { %2210 = vmatmul.msk.f32.gmra.mxu2 %vm3938_vm0, %v875_v20 }
 0x228   :  { %v751_v33 = vpop.permute.xlu0 %750 }
 0x229   :  { %2181 = vmatmul.msk.f32.gmra.mxu1 %vm3938_vm0, %v751_v33  ;;  %v3247_v33 = vpop.f32.mrf.mxu1 }
 0x22b   :  { %2211 = vmatmul.msk.f32.gmra.mxu2 %vm3938_vm0, %v876_v51 }
 0x230   :  { %v755_v54 = vpop.permute.xlu0 %754 }
 0x231   :  { %2182 = vmatmul.msk.f32.gmra.mxu1 %vm3938_vm0, %v753_v15  ;;  %v945_v26 = vpop.f32.mrf.mxu2  ;;  %v816_v15 = vpop.f32.mrf.mxu1 }
 0x238   :  { %v757_v37 = vpop.permute.xlu1 %756 }
 0x239   :  { %2183 = vmatmul.msk.f32.gmra.mxu1 %vm3938_vm0, %v755_v54  ;;  %v819_v5 = vpop.f32.mrf.mxu1 }
 0x23a   :  { %v948_v3 = vpop.f32.mrf.mxu2 }
 0x241   :  { %2184 = vmatmul.msk.f32.gmra.mxu1 %vm3938_vm0, %v757_v37  ;;  %v822_v51 = vpop.f32.mrf.mxu1 }
 0x242   :  { %v951_v25 = vpop.f32.mrf.mxu2 }
 0x249   :  { %2185 = vmatmul.msk.f32.gmra.mxu1 %vm3938_vm0, %v759_v46  ;;  %v825_v35 = vpop.f32.mrf.mxu1 }
 0x24a   :  { %v954_v50 = vpop.f32.mrf.mxu2 }
 0x251   :  { %v828_v59 = vpop.f32.mrf.mxu1 }
 0x252   :  { %v957_v40 = vpop.f32.mrf.mxu2 }
 0x259   :  { %v831_v21 = vpop.f32.mrf.mxu1 }
 0x25a   :  { %v960_v6 = vpop.f32.mrf.mxu2 }
 0x262   :  { %v963_v48 = vpop.f32.mrf.mxu2 }
 0x26a   :  { %v966_v20 = vpop.f32.mrf.mxu2 }
 0x272   :  { %v969_v54 = vpop.f32.mrf.mxu2 }
 0x27a   :  { %v972_v37 = vpop.f32.mrf.mxu2 }
 0x27d   :  { %v761_v42 = vpop.permute.xlu0 %760 }
 0x27e   :  { %2186 = vmatmul.msk.f32.gmra.mxu1 %vm3938_vm0, %v761_v42  ;;  %v834_v30 = vpop.f32.mrf.mxu1 }
 0x285   :  { %v763_v49 = vpop.permute.xlu1 %762 }
 0x286   :  { %2187 = vmatmul.msk.f32.gmra.mxu1 %vm3938_vm0, %v763_v49  ;;  %v837_v42 = vpop.f32.mrf.mxu1 }
 0x28e   :  { %v975_v46 = vpop.f32.mrf.mxu2 }
 0x296   :  { %v978_v7 = vpop.f32.mrf.mxu2 }
 0x29e   :  { %v981_v44 = vpop.f32.mrf.mxu2 }
 0x2a6   :  { %v984_v27 = vpop.f32.mrf.mxu2  ;;  %v840_v49 = vpop.f32.mrf.mxu1 }
 0x2ae   :  { %v987_v38 = vpop.f32.mrf.mxu2  ;;  %v843_v39 = vpop.f32.mrf.mxu1 }
 0x2af   :  { %1586 = vmatpush.msra.mxu2 %v987_v38 }
 0x2b1   :  { %1587 = vmatpush.msra.mxu2 %v984_v27 }
 0x2b3   :  { %1588 = vmatpush.msra.mxu2 %v981_v44 }
 0x2b5   :  { %1589 = vmatpush.msra.mxu2 %v978_v7 }
 0x2b6   :  { %v846_v47 = vpop.f32.mrf.mxu1 }
 0x2b7   :  { %1590 = vmatpush.msra.mxu2 %v975_v46 }
 0x2b9   :  { %1591 = vmatpush.msra.mxu2 %v972_v37  ;;  %v3989_v37 = vand.u32 7, %v2931_v28 }
 0x2bb   :  { %1592 = vmatpush.msra.mxu2 %v969_v54  ;;  %v3986_v54 = vand.u32 7, %v2947_v31  ;;  %vm3318_vm14 = vcmp.eq.s32.totalorder %v3989_v37, %v2616_v12 }
 0x2bd   :  { %1593 = vmatpush.msra.mxu2 %v966_v20  ;;  %v3983_v20 = vand.u32 7, %v2984_v29  ;;  %vm3308_vm13 = vcmp.eq.s32.totalorder %v3986_v54, %v2616_v12 }
 0x2be   :  { %v849_v38 = vpop.f32.mrf.mxu1 }
 0x2bf   :  { %1594 = vmatpush.msra.mxu2 %v963_v48  ;;  %v3980_v48 = vand.u32 7, %v3028_v19  ;;  %vm3298_vm12 = vcmp.eq.s32.totalorder %v3983_v20, %v2616_v12  ;;  %v4009_v20 = vshra.s32 %v2647_v22, 3  ;;  %v4011_v22 = vshra.s32 %v2685_v36, 3 }
 0x2c0   :  { %v4013_v36 = vshra.s32 %v2748_v52, 3  ;;  %v4015_v52 = vshra.s32 %v2854_v4, 3 }
 0x2c1   :  { %1595 = vmatpush.msra.mxu2 %v960_v6  ;;  %v3979_v6 = vmov 1.0   ;;  %vm3291_vm7 = vcmp.eq.s32.totalorder %v3980_v48, %v2616_v12 }
 0x2c3   :  { %1596 = vmatpush.msra.mxu2 %v957_v40 }
 0x2c5   :  { %1597 = vmatpush.msra.mxu2 %v954_v50  ;;  %v3976_v50 = vand.u32 7, %v3064_v63 }
 0x2c6   :  { %v852_v27 = vpop.f32.mrf.mxu1 }
 0x2c7   :  { %1598 = vmatpush.msra.mxu2 %v951_v25  ;;  %vm3280_vm6 = vcmp.eq.s32.totalorder %v3976_v50, %v2616_v12 }
 0x2c8   :  { %2244 = vmatpush.msk.msrb.mxu0 %vm3280_vm6, %v3979_v6 }
 0x2c9   :  { %1599 = vmatpush.msra.mxu2 %v948_v3 }
 0x2ca   :  { %2245 = vmatpush.msk.msrb.mxu0 %vm3291_vm7, %v3979_v6 }
 0x2cb   :  { %1600 = vmatpush.msra.mxu2 %v945_v26 }
 0x2cc   :  { %2246 = vmatpush.msk.msrb.mxu0 %vm3298_vm12, %v3979_v6 }
 0x2cd   :  { %1601 = vmatpush.msra.mxu2 %v942_v34  ;;  %v588_v34 = vpop.f32.mrf.mxu0 }
 0x2ce   :  { %2247 = vmatpush.msk.msrb.mxu0 %vm3308_vm13, %v3979_v6 }
 0x2d0   :  { %2248 = vmatpush.msk.msrb.mxu0 %vm3318_vm14, %v3979_v6 }
 0x2d5   :  { %v591_v26 = vpop.f32.mrf.mxu0 }
 0x2fb   :  { %v855_v44 = vpop.f32.mrf.mxu1 }
 0x303   :  { %v858_v7 = vpop.f32.mrf.mxu1 }
 0x304   :  { %2212 = vmatpush.xpose.msk.msrb.mxu3 %vm3939_vm5, %v858_v7  ;;  %v3998_v7 = vand.u32 7, %v2854_v4  ;;  %v4017_v4 = vshra.s32 %v2913_v17, 3 }
 0x308   :  { %2213 = vmatpush.xpose.msk.msrb.mxu3 %vm3939_vm5, %v855_v44  ;;  %v3996_v44 = vmov 0 }
 0x30c   :  { %2214 = vmatpush.xpose.msk.msrb.mxu3 %vm3939_vm5, %v852_v27  ;;  %v3995_v27 = vand.u32 7, %v2910_v16 }
 0x30e   :  { %vm3339_vm0 = vcmp.eq.s32.totalorder %v3995_v27, %v2616_v12 }
 0x30f   :  { %v3997_v44 = vsel %vm3339_vm0, 4294967295, %v3996_v44 }
 0x310   :  { %2215 = vmatpush.xpose.msk.msrb.mxu3 %vm3939_vm5, %v849_v38  ;;  %v3993_v38 = vmov 0 }
 0x314   :  { %2216 = vmatpush.xpose.msk.msrb.mxu3 %vm3939_vm5, %v846_v47  ;;  %v594_v47 = vpop.f32.mrf.mxu0 }
 0x318   :  { %2217 = vmatpush.xpose.msk.msrb.mxu3 %vm3939_vm5, %v843_v39 }
 0x31c   :  { %2218 = vmatpush.xpose.msk.msrb.mxu3 %vm3939_vm5, %v840_v49  ;;  %v3992_v49 = vand.u32 7, %v2913_v17  ;;  %v4019_v17 = vshra.s32 %v2947_v31, 3  ;;  %v4021_v31 = vshra.s32 %v3028_v19, 3 }
 0x31e   :  { %vm3332_vm8 = vcmp.eq.s32.totalorder %v3992_v49, %v2616_v12  ;;  %v4010_v49 = vshra.s32 %v2653_v24, 3  ;;  %v4012_v24 = vshra.s32 %v2718_v45, 3  ;;  %v4014_v45 = vshra.s32 %v2751_v53, 3 }
 0x31f   :  { %v3994_v38 = vsel %vm3332_vm8, 4294967295, %v3993_v38  ;;  %2249 = vmatpush.msk.msrb.mxu0 %vm3332_vm8, %v3979_v6  ;;  %vm4001_vm8 = vcmask 64512   ;;  %v4016_v53 = vshra.s32 %v2910_v16, 3  ;;  %v4018_v16 = vshra.s32 %v2931_v28, 3 }
 0x320   :  { %2219 = vmatpush.xpose.msk.msrb.mxu3 %vm3939_vm5, %v837_v42  ;;  %v4020_v28 = vshra.s32 %v2984_v29, 3  ;;  %v4022_v29 = vshra.s32 %v3064_v63, 3 }
 0x321   :  { %2250 = vmatpush.msk.msrb.mxu0 %vm3339_vm0, %v3979_v6 }
 0x324   :  { %2220 = vmatpush.xpose.msk.msrb.mxu3 %vm3939_vm5, %v834_v30  ;;  %v597_v30 = vpop.f32.mrf.mxu0 }
 0x328   :  { %2221 = vmatpush.xpose.msk.msrb.mxu3 %vm3939_vm5, %v831_v21 }
 0x32c   :  { %2222 = vmatpush.xpose.msk.msrb.mxu3 %vm3939_vm5, %v828_v59  ;;  %v600_v21 = vpop.f32.mrf.mxu0 }
 0x330   :  { %2223 = vmatpush.xpose.msk.msrb.mxu3 %vm3939_vm5, %v825_v35 }
 0x334   :  { %2224 = vmatpush.xpose.msk.msrb.mxu3 %vm3939_vm5, %v822_v51  ;;  %v603_v39 = vpop.f32.mrf.mxu0 }
 0x338   :  { %2225 = vmatpush.xpose.msk.msrb.mxu3 %vm3939_vm5, %v819_v5 }
 0x33c   :  { %2226 = vmatpush.xpose.msk.msrb.mxu3 %vm3939_vm5, %v816_v15  ;;  %v606_v59 = vpop.f32.mrf.mxu0 }
 0x340   :  { %2227 = vmatpush.xpose.msk.msrb.mxu3 %vm3939_vm5, %v3247_v33 }
 0x343   :  { %2228 = vmatmul.msk.f32.vlgmr.msrb.gmra.mxu3 %vm3939_vm5, %v588_v34  ;;  %v3999_v34 = vmov 0 }
 0x344   :  { %v609_v35 = vpop.f32.mrf.mxu0 }
 0x34b   :  { %2229 = vmatmul.msk.f32.gmra.mxu3 %vm3939_vm5, %v591_v26 }
 0x34c   :  { %v612_v3 = vpop.f32.mrf.mxu0 }
 0x353   :  { %2230 = vmatmul.msk.f32.gmra.mxu3 %vm3939_vm5, %v594_v47 }
 0x354   :  { %v615_v25 = vpop.f32.mrf.mxu0 }
 0x35b   :  { %2231 = vmatmul.msk.f32.gmra.mxu3 %vm3939_vm5, %v597_v30 }
 0x35c   :  { %v618_v33 = vpop.f32.mrf.mxu0 }
 0x363   :  { %2232 = vmatmul.msk.f32.gmra.mxu3 %vm3939_vm5, %v600_v21  ;;  %v4006_v21 = vshra.s32 %v2614_v11, 3 }
 0x364   :  { %v621_v42 = vpop.f32.mrf.mxu0 }
 0x36b   :  { %2233 = vmatmul.msk.f32.gmra.mxu3 %vm3939_vm5, %v603_v39  ;;  %v4007_v39 = vmov 0.0  }
 0x36c   :  { %v624_v26 = vpop.f32.mrf.mxu0  ;;  %v223_v40 = vsel %vm3291_vm7, 1.0, %v4007_v39  ;;  %v207_v5 = vsel %vm2774_vm1, 1.0, %v4007_v39  ;;  %v220_v57 = vsel %vm3318_vm14, 1.0, %v4007_v39  ;;  %v206_v51 = vsel %vm2790_vm2, 1.0, %v4007_v39 }
 0x36d   :  { %v205_v46 = vsel %vm2808_vm3, 1.0, %v4007_v39 }
 0x373   :  { %2234 = vmatmul.msk.f32.gmra.mxu3 %vm3939_vm5, %v606_v59 }
 0x37b   :  { %2235 = vmatmul.msk.f32.gmra.mxu3 %vm3939_vm5, %v609_v35 }
 0x383   :  { %2236 = vmatmul.msk.f32.gmra.mxu3 %vm3939_vm5, %v612_v3 }
 0x38b   :  { %2237 = vmatmul.msk.f32.gmra.mxu3 %vm3939_vm5, %v615_v25  ;;  %v4008_v25 = vshra.s32 %v2619_v13, 3 }
 0x393   :  { %2238 = vmatmul.msk.f32.gmra.mxu3 %vm3939_vm5, %v618_v33  ;;  %vm3349_vm5 = vcmp.eq.s32.totalorder %v3998_v7, %v2616_v12  ;;  %v627_v12 = vpop.f32.mrf.mxu0 }
 0x394   :  { %v4000_v34 = vsel %vm3349_vm5, 4294967295, %v3999_v34  ;;  %2251 = vmatpush.msk.msrb.mxu0 %vm3349_vm5, %v3979_v6  ;;  %vm4002_vm5 = vmmov %vm4001_vm8 }
 0x395   :  { %vm4004_vm0 = vmmov %vm4002_vm5 }
 0x396   :  { %2252 = vmatpush.msk.msrb.mxu0 %vm2769_vm15, %v3979_v6 }
 0x398   :  { %2253 = vmatpush.msk.msrb.mxu0 %vm2774_vm1, %v3979_v6 }
 0x39a   :  { %2254 = vmatpush.msk.msrb.mxu0 %vm2790_vm2, %v3979_v6 }
 0x39b   :  { %2239 = vmatmul.msk.f32.gmra.mxu3 %vm4001_vm8, %v621_v42  ;;  %vm4003_vm8 = vmmov %vm4002_vm5  ;;  %v630_v47 = vpop.f32.mrf.mxu0 }
 0x39c   :  { %2255 = vmatpush.msk.msrb.mxu0 %vm2808_vm3, %v3979_v6 }
 0x39e   :  { %2256 = vmatpush.msk.msrb.mxu0 %vm2825_vm4, %v3979_v6 }
 0x3a0   :  { %2257 = vmatpush.msk.msrb.mxu0 %vm2873_vm9, %v3979_v6  ;;  %vm225_vm9 = vcmp.eq.s32.totalorder %v4006_v21, %v2622_v14 }
 0x3a1   :  { %v3392_v59 = vsel %vm225_vm9, 1.0, %v4007_v39  ;;  %vm228_vm9 = vcmp.eq.s32.totalorder %v4010_v49, %v2622_v14 }
 0x3a2   :  { %2258 = vmatpush.msk.msrb.mxu0 %vm2886_vm10, %v3979_v6  ;;  %v3413_v27 = vsel %vm228_vm9, 1.0, %v4007_v39  ;;  %vm232_vm9 = vcmp.eq.s32.totalorder %v4014_v45, %v2622_v14 }
 0x3a3   :  { %2240 = vmatmul.msk.f32.gmra.mxu3 %vm4002_vm5, %v624_v26  ;;  %v633_v30 = vpop.f32.mrf.mxu0  ;;  %vm4005_vm5 = vmmov %vm4004_vm0 }
 0x3a4   :  { %2259 = vmatpush.msk.msrb.mxu0 %vm2899_vm11, %v3979_v6 }
 0x3ab   :  { %2241 = vmatmul.msk.f32.gmra.mxu3 %vm4003_vm8, %v627_v12  ;;  %vm226_vm8 = vcmp.eq.s32.totalorder %v4008_v25, %v2622_v14 }
 0x3ac   :  { %v3399_v50 = vsel %vm226_vm8, 1.0, %v4007_v39  ;;  %vm230_vm8 = vcmp.eq.s32.totalorder %v4012_v24, %v2622_v14 }
 0x3ad   :  { %v3427_v21 = vsel %vm230_vm8, 1.0, %v4007_v39  ;;  %vm234_vm8 = vcmp.eq.s32.totalorder %v4016_v53, %v2622_v14 }
 0x3b3   :  { %2242 = vmatmul.msk.f32.gmra.mxu3 %vm4004_vm0, %v630_v47  ;;  %vm227_vm0 = vcmp.eq.s32.totalorder %v4009_v20, %v2622_v14  ;;  %v3441_v20 = vsel %vm232_vm9, 1.0, %v4007_v39  ;;  %vm236_vm9 = vcmp.eq.s32.totalorder %v4018_v16, %v2622_v14 }
 0x3b4   :  { %v3406_v54 = vsel %vm227_vm0, 1.0, %v4007_v39  ;;  %vm231_vm0 = vcmp.eq.s32.totalorder %v4013_v36, %v2622_v14  ;;  %v3469_v36 = vsel %vm236_vm9, 1.0, %v4007_v39  ;;  %vm240_vm9 = vcmp.eq.s32.totalorder %v4022_v29, %v2622_v14 }
 0x3b5   :  { %v3434_v25 = vsel %vm231_vm0, 1.0, %v4007_v39  ;;  %vm235_vm0 = vcmp.eq.s32.totalorder %v4017_v4, %v2622_v14  ;;  %v3497_v4 = vsel %vm240_vm9, 1.0, %v4007_v39 }
 0x3b6   :  { %v3462_v24 = vsel %vm235_vm0, 1.0, %v4007_v39  ;;  %vm239_vm0 = vcmp.eq.s32.totalorder %v4021_v31, %v2622_v14 }
 0x3b7   :  { %v3490_v53 = vsel %vm239_vm0, 1.0, %v4007_v39 }
 0x3bb   :  { %2243 = vmatmul.msk.f32.gmra.mxu3 %vm4005_vm5, %v633_v30  ;;  %vm229_vm5 = vcmp.eq.s32.totalorder %v4011_v22, %v2622_v14  ;;  %v3455_v22 = vsel %vm234_vm8, 1.0, %v4007_v39  ;;  %vm238_vm8 = vcmp.eq.s32.totalorder %v4020_v28, %v2622_v14 }
 0x3bc   :  { %v3420_v12 = vsel %vm229_vm5, 1.0, %v4007_v39  ;;  %vm233_vm5 = vcmp.eq.s32.totalorder %v4015_v52, %v2622_v14  ;;  %v3483_v52 = vsel %vm238_vm8, 1.0, %v4007_v39 }
 0x3bd   :  { %v3448_v49 = vsel %vm233_vm5, 1.0, %v4007_v39  ;;  %vm237_vm5 = vcmp.eq.s32.totalorder %v4019_v17, %v2622_v14 }
 0x3be   :  { %v3476_v45 = vsel %vm237_vm5, 1.0, %v4007_v39  ;;  %vm4023_vm5 = vcmask 64512  }
 0x3bf   :  { %vm4024_vm8 = vmmov %vm4023_vm5 }
 0x3c0   :  { %vm4025_vm0 = vmmov %vm4023_vm5 }
 0x3c1   :  { %vm4026_vm11 = vmmov %vm4025_vm0 }
 0x3c2   :  { %vm4027_vm9 = vmmov %vm4025_vm0 }
 0x3c3   :  { %vm4028_vm10 = vmmov %vm4025_vm0 }
 0x3c4   :  { %vm4043_vm7 = vmmov %vm4025_vm0 }
 0x3c5   :  { %vm4046_vm1 = vmmov %vm4025_vm0 }
 0x3c6   :  { %v1104_v35 = vpop.f32.mrf.mxu3  ;;  %vm4049_vm2 = vmmov %vm4025_vm0 }
 0x3c7   :  { %v1152_v3 = vmul.f32 %v1104_v35, %v3392_v59  ;;  %vm4050_vm14 = vmmov %vm4025_vm0 }
 0x3c8   :  { %vm4053_vm3 = vmmov %vm4025_vm0 }
 0x3c9   :  { %1184 = vmatmul.f32.vlgmr.msrb.gmra.mxu0 %v1152_v3 }
 0x3ce   :  { %v1107_v33 = vpop.f32.mrf.mxu3 }
 0x3cf   :  { %v1153_v48 = vmul.f32 %v1107_v33, %v3399_v50 }
 0x3d1   :  { %1187 = vmatmul.f32.gmra.mxu0 %v1153_v48 }
 0x3d6   :  { %v1110_v37 = vpop.f32.mrf.mxu3 }
 0x3d7   :  { %v1154_v42 = vmul.f32 %v1110_v37, %v3406_v54 }
 0x3d9   :  { %1190 = vmatmul.f32.gmra.mxu0 %v1154_v42 }
 0x3de   :  { %v1113_v7 = vpop.f32.mrf.mxu3 }
 0x3df   :  { %v1155_v26 = vmul.f32 %v1113_v7, %v3413_v27 }
 0x3e1   :  { %1193 = vmatmul.f32.gmra.mxu0 %v1155_v26 }
 0x3e6   :  { %v1116_v47 = vpop.f32.mrf.mxu3 }
 0x3e7   :  { %v1156_v30 = vmul.f32 %v1116_v47, %v3420_v12 }
 0x3e9   :  { %1196 = vmatmul.f32.gmra.mxu0 %v1156_v30 }
 0x3ee   :  { %v1119_v35 = vpop.f32.mrf.mxu3 }
 0x3ef   :  { %v1157_v3 = vmul.f32 %v1119_v35, %v3427_v21 }
 0x3f1   :  { %1199 = vmatmul.f32.gmra.mxu0 %v1157_v3 }
 0x3f6   :  { %v1122_v33 = vpop.f32.mrf.mxu3 }
 0x3f7   :  { %v1158_v48 = vmul.f32 %v1122_v33, %v3434_v25 }
 0x3f9   :  { %1202 = vmatmul.f32.gmra.mxu0 %v1158_v48 }
 0x3fe   :  { %v1125_v37 = vpop.f32.mrf.mxu3 }
 0x3ff   :  { %v1159_v42 = vmul.f32 %v1125_v37, %v3441_v20 }
 0x401   :  { %1205 = vmatmul.f32.gmra.mxu0 %v1159_v42 }
 0x406   :  { %v1128_v7 = vpop.f32.mrf.mxu3 }
 0x407   :  { %v1160_v26 = vmul.f32 %v1128_v7, %v3448_v49 }
 0x409   :  { %1208 = vmatmul.f32.gmra.mxu0 %v1160_v26 }
 0x40e   :  { %v1131_v47 = vpop.f32.mrf.mxu3 }
 0x40f   :  { %v1161_v30 = vmul.f32 %v1131_v47, %v3455_v22 }
 0x411   :  { %1211 = vmatmul.f32.gmra.mxu0 %v1161_v30 }
 0x416   :  { %v1134_v35 = vpop.f32.mrf.mxu3 }
 0x417   :  { %v1162_v3 = vmul.f32 %v1134_v35, %v3462_v24 }
 0x419   :  { %1214 = vmatmul.f32.gmra.mxu0 %v1162_v3 }
 0x41e   :  { %v1137_v33 = vpop.f32.mrf.mxu3 }
 0x41f   :  { %v1163_v48 = vmul.f32 %v1137_v33, %v3469_v36 }
 0x421   :  { %1217 = vmatmul.f32.gmra.mxu0 %v1163_v48 }
 0x426   :  { %v1140_v37 = vpop.f32.mrf.mxu3 }
 0x427   :  { %v1164_v42 = vmul.f32 %v1140_v37, %v3476_v45 }
 0x429   :  { %1220 = vmatmul.f32.gmra.mxu0 %v1164_v42 }
 0x42e   :  { %v1143_v7 = vpop.f32.mrf.mxu3 }
 0x42f   :  { %v1165_v26 = vmul.f32 %v1143_v7, %v3483_v52 }
 0x431   :  { %1223 = vmatmul.f32.gmra.mxu0 %v1165_v26 }
 0x436   :  { %v1146_v47 = vpop.f32.mrf.mxu3 }
 0x437   :  { %v1166_v30 = vmul.f32 %v1146_v47, %v3490_v53 }
 0x439   :  { %1226 = vmatmul.f32.gmra.mxu0 %v1166_v30 }
 0x43e   :  { %v1149_v35 = vpop.f32.mrf.mxu3 }
 0x43f   :  { %v1167_v3 = vmul.f32 %v1149_v35, %v3497_v4 }
 0x441   :  { %1229 = vmatmul.f32.gmra.mxu0 %v1167_v3 }
 0x446   :  { %v1185_v19 = vpop.f32.mrf.mxu0 }
 0x447   :  { %v1233_v16 = vsel %vm4023_vm5, %v1185_v19, -inf  ;;  %vm4029_vm5 = vmmov %vm4025_vm0 }
 0x448   :  { %1234 = vmax.xlane.f32.xlu2 %v1233_v16 }
 0x44e   :  { %v1188_v33 = vpop.f32.mrf.mxu0 }
 0x44f   :  { %v1236_v48 = vsel %vm4024_vm8, %v1188_v33, -inf  ;;  %vm4030_vm8 = vmmov %vm4025_vm0 }
 0x450   :  { %1237 = vmax.xlane.f32.xlu0 %v1236_v48 }
 0x456   :  { %v1191_v17 = vpop.f32.mrf.mxu0 }
 0x457   :  { %v1239_v37 = vsel %vm4025_vm0, %v1191_v17, -inf }
 0x458   :  { %1240 = vmax.xlane.f32.xlu1 %v1239_v37 }
 0x45e   :  { %v1194_v63 = vpop.f32.mrf.mxu0 }
 0x45f   :  { %v1242_v42 = vsel %vm4026_vm11, %v1194_v63, -inf  ;;  %vm4032_vm11 = vmmov %vm4025_vm0 }
 0x460   :  { %1243 = vmax.xlane.f32.xlu2 %v1242_v42 }
 0x466   :  { %v1197_v28 = vpop.f32.mrf.mxu0 }
 0x467   :  { %v1245_v7 = vsel %vm4027_vm9, %v1197_v28, -inf  ;;  %vm4033_vm9 = vmmov %vm4025_vm0 }
 0x468   :  { %1246 = vmax.xlane.f32.xlu2 %v1245_v7 }
 0x46e   :  { %v1200_v26 = vpop.f32.mrf.mxu0 }
 0x46f   :  { %v1248_v31 = vsel %vm4028_vm10, %v1200_v26, -inf  ;;  %vm4031_vm10 = vmmov %vm4025_vm0 }
 0x470   :  { %1249 = vmax.xlane.f32.xlu0 %v1248_v31 }
 0x476   :  { %v3506_v47 = vpop.f32.mrf.mxu0 }
 0x477   :  { %v1251_v30 = vsel %vm4029_vm5, %v3506_v47, -inf  ;;  %vm4034_vm5 = vmmov %vm4025_vm0 }
 0x478   :  { %1252 = vmax.xlane.f32.xlu1 %v1251_v30 }
 0x47e   :  { %v3510_v29 = vpop.f32.mrf.mxu0 }
 0x47f   :  { %v1254_v35 = vsel %vm4030_vm8, %v3510_v29, -inf  ;;  %vm4035_vm8 = vmmov %vm4025_vm0 }
 0x480   :  { %1255 = vmax.xlane.f32.xlu0 %v1254_v35 }
 0x486   :  { %v3514_v48 = vpop.f32.mrf.mxu0 }
 0x48e   :  { %v3520_v6 = vpop.f32.mrf.mxu0 }
 0x4bb   :  { %v1235_v3 = vpop.xlane.xlu2 %1234 }
 0x4bc   :  { %v1281_v16 = vsub.f32 %v1185_v19, %v1235_v3 }
 0x4be   :  { %v1297_v37 = vmul.f32 1.442695, %v1281_v16  ;;  %v3528_v16 = vpop.f32.mrf.mxu0 }
 0x4c0   :  { %2337 = vpow2.f32 %v1297_v37 }
 0x4c3   :  { %v1238_v42 = vpop.xlane.xlu0 %1237 }
 0x4c4   :  { %v1282_v7 = vsub.f32 %v1188_v33, %v1238_v42  ;;  %v1257_v33 = vsel %vm4025_vm0, %v3514_v48, -inf }
 0x4c6   :  { %v3516_v31 = vpop.eup %2337  ;;  %v1299_v13 = vmul.f32 1.442695, %v1282_v7 }
 0x4c7   :  { %v1329_v30 = vsel %vm4031_vm10, %v3516_v31, 0.0  ;;  %vm4036_vm10 = vmmov %vm4025_vm0 }
 0x4c8   :  { %2339 = vpow2.f32 %v1299_v13  ;;  %1330 = vadd.xlane.f32.xlu2 %v1329_v30 }
 0x4cb   :  { %v1241_v11 = vpop.xlane.xlu1 %1240 }
 0x4cc   :  { %v1283_v35 = vsub.f32 %v1191_v17, %v1241_v11  ;;  %v1260_v17 = vsel %vm4034_vm5, %v3520_v6, -inf  ;;  %vm4040_vm5 = vmmov %vm4025_vm0 }
 0x4ce   :  { %v3522_v14 = vpop.eup %2339  ;;  %v1301_v19 = vmul.f32 1.442695, %v1283_v35  ;;  %v3536_v35 = vpop.f32.mrf.mxu0 }
 0x4cf   :  { %v1332_v3 = vsel %vm4032_vm11, %v3522_v14, 0.0  ;;  %vm4037_vm11 = vmmov %vm4025_vm0 }
 0x4d0   :  { %2341 = vpow2.f32 %v1301_v19  ;;  %1333 = vadd.xlane.f32.xlu1 %v1332_v3  ;;  %1258 = vmax.xlane.f32.xlu2 %v1257_v33 }
 0x4d3   :  { %v1244_v37 = vpop.xlane.xlu2 %1243 }
 0x4d4   :  { %v1284_v42 = vsub.f32 %v1194_v63, %v1244_v37  ;;  %v1263_v37 = vsel %vm4036_vm10, %v3528_v16, -inf  ;;  %vm4045_vm10 = vmmov %vm4025_vm0 }
 0x4d6   :  { %v3530_v13 = vpop.eup %2341  ;;  %v1303_v7 = vmul.f32 1.442695, %v1284_v42  ;;  %v224_v42 = vsel %vm3280_vm6, 1.0, %v4007_v39  ;;  %vm4039_vm6 = vmmov %vm4025_vm0 }
 0x4d7   :  { %v1335_v11 = vsel %vm4033_vm9, %v3530_v13, 0.0  ;;  %2260 = vmatpush.xpose.msk.msrb.mxu1 %vm4037_vm11, %v224_v42  ;;  %vm4038_vm9 = vmmov %vm4025_vm0  ;;  %vm4048_vm11 = vnez %v3994_v38  ;;  %v204_v38 = vsel %vm2825_vm4, 1.0, %v4007_v39 }
 0x4d8   :  { %2343 = vpow2.f32 %v1303_v7  ;;  %1336 = vadd.xlane.f32.xlu0 %v1335_v11  ;;  %1261 = vmax.xlane.f32.xlu1 %v1260_v17  ;;  %v3550_v17 = vpop.f32.mrf.mxu0  ;;  %vm4059_vm4 = vmmov %vm4025_vm0 }
 0x4db   :  { %v1247_v30 = vpop.xlane.xlu2 %1246  ;;  %2261 = vmatpush.xpose.msk.msrb.mxu1 %vm4039_vm6, %v223_v40  ;;  %vm4052_vm6 = vnez %v3997_v44 }
 0x4dc   :  { %v1285_v19 = vsub.f32 %v1197_v28, %v1247_v30  ;;  %v218_v0 = vsel %vm4052_vm6, 1.0, %v4007_v39  ;;  %vm4067_vm6 = vnez %v3973_v9 }
 0x4de   :  { %v3538_v3 = vpop.eup %2343  ;;  %v1305_v33 = vmul.f32 1.442695, %v1285_v19 }
 0x4df   :  { %v1338_v63 = vsel %vm4035_vm8, %v3538_v3, 0.0  ;;  %vm4041_vm8 = vmmov %vm4025_vm0 }
 0x4e0   :  { %2345 = vpow2.f32 %v1305_v33  ;;  %1339 = vadd.xlane.f32.xlu2 %v1338_v63  ;;  %1264 = vmax.xlane.f32.xlu0 %v1263_v37  ;;  %v1266_v33 = vsel %vm4038_vm9, %v3536_v35, -inf  ;;  %v208_v63 = vsel %vm2769_vm15, 1.0, %v4007_v39  ;;  %vm4042_vm15 = vmmov %vm4025_vm0 }
 0x4e1   :  { %2292 = vmatpush.xpose.msk.msra.mxu3 %vm4040_vm5, %v208_v63  ;;  %vm4051_vm9 = vmmov %vm4025_vm0 }
 0x4e2   :  { %vm4054_vm5 = vmmov %vm4025_vm0 }
 0x4e3   :  { %v1250_v7 = vpop.xlane.xlu0 %1249 }
 0x4e4   :  { %v1286_v28 = vsub.f32 %v1200_v26, %v1250_v7  ;;  %v222_v26 = vsel %vm3298_vm12, 1.0, %v4007_v39  ;;  %vm4044_vm12 = vmmov %vm4025_vm0 }
 0x4e5   :  { %2262 = vmatpush.xpose.msk.msrb.mxu1 %vm4041_vm8, %v222_v26  ;;  %2293 = vmatpush.xpose.msk.msra.mxu3 %vm4044_vm12, %v207_v5  ;;  %vm4055_vm8 = vnez %v4000_v34  ;;  %vm4058_vm12 = vmmov %vm4025_vm0  ;;  %v202_v34 = vsel %vm4067_vm6, 1.0, %v4007_v39 }
 0x4e6   :  { %v3548_v11 = vpop.eup %2345  ;;  %v1307_v30 = vmul.f32 1.442695, %v1286_v28  ;;  %v221_v28 = vsel %vm3308_vm13, 1.0, %v4007_v39  ;;  %vm4047_vm13 = vmmov %vm4025_vm0 }
 0x4e7   :  { %v1341_v19 = vsel %vm4025_vm0, %v3548_v11, 0.0  ;;  %vm4082_vm6 = vmmov %vm4025_vm0 }
 0x4e8   :  { %2347 = vpow2.f32 %v1307_v30  ;;  %1342 = vadd.xlane.f32.xlu1 %v1341_v19  ;;  %1267 = vmax.xlane.f32.xlu2 %v1266_v33  ;;  %v1269_v30 = vsel %vm4043_vm7, %v3550_v17, -inf  ;;  %vm4057_vm7 = vmmov %vm4025_vm0 }
 0x4e9   :  { %2263 = vmatpush.xpose.msk.msrb.mxu1 %vm4045_vm10, %v221_v28  ;;  %2294 = vmatpush.xpose.msk.msra.mxu3 %vm4046_vm1, %v206_v51  ;;  %v217_v28 = vsel %vm4055_vm8, 1.0, %v4007_v39  ;;  %vm4060_vm10 = vmmov %vm4025_vm0  ;;  %vm4070_vm8 = vnez %v3975_v10 }
 0x4ea   :  { %vm4061_vm1 = vmmov %vm4025_vm0 }
 0x4eb   :  { %v1253_v37 = vpop.xlane.xlu1 %1252 }
 0x4ec   :  { %v1287_v42 = vsub.f32 %v3506_v47, %v1253_v37  ;;  %v3582_v47 = vpop.f32.mrf.mxu0  ;;  %v219_v37 = vsel %vm4048_vm11, 1.0, %v4007_v39  ;;  %vm4063_vm11 = vmmov %vm4025_vm0 }
 0x4ed   :  { %2264 = vmatpush.xpose.msk.msrb.mxu1 %vm4047_vm13, %v220_v57  ;;  %2295 = vmatpush.xpose.msk.msra.mxu3 %vm4025_vm0, %v205_v46  ;;  %vm4062_vm13 = vmmov %vm4025_vm0 }
 0x4ee   :  { %v3569_v7 = vpop.eup %2347  ;;  %v1309_v15 = vmul.f32 1.442695, %v1287_v42  ;;  %v1272_v42 = vsel %vm4050_vm14, %v3582_v47, -inf  ;;  %vm4065_vm14 = vmmov %vm4025_vm0 }
 0x4ef   :  { %v1344_v56 = vsel %vm4042_vm15, %v3569_v7, 0.0  ;;  %vm4056_vm15 = vnez %v3971_v8 }
 0x4f0   :  { %2349 = vpow2.f32 %v1309_v15  ;;  %1345 = vadd.xlane.f32.xlu0 %v1344_v56  ;;  %1270 = vmax.xlane.f32.xlu1 %v1269_v30  ;;  %v203_v56 = vsel %vm4056_vm15, 1.0, %v4007_v39  ;;  %vm4071_vm15 = vmmov %vm4025_vm0 }
 0x4f1   :  { %2265 = vmatpush.xpose.msk.msrb.mxu1 %vm4051_vm9, %v219_v37  ;;  %2296 = vmatpush.xpose.msk.msra.mxu3 %vm4053_vm3, %v204_v38  ;;  %vm4066_vm9 = vmmov %vm4025_vm0 }
 0x4f2   :  { %vm4068_vm3 = vmmov %vm4025_vm0 }
 0x4f3   :  { %v1256_v19 = vpop.xlane.xlu0 %1255 }
 0x4f4   :  { %v1288_v33 = vsub.f32 %v3510_v29, %v1256_v19  ;;  %v3608_v29 = vpop.f32.mrf.mxu0 }
 0x4f5   :  { %2266 = vmatpush.xpose.msk.msrb.mxu1 %vm4054_vm5, %v218_v0  ;;  %v1275_v1 = vsel %vm4058_vm12, %v3608_v29, -inf  ;;  %2297 = vmatpush.xpose.msk.msra.mxu3 %vm4059_vm4, %v203_v56  ;;  %vm4069_vm5 = vmmov %vm4025_vm0 }
 0x4f6   :  { %v3594_v40 = vpop.eup %2349  ;;  %v1311_v26 = vmul.f32 1.442695, %v1288_v33  ;;  %vm4073_vm12 = vmmov %vm4025_vm0 }
 0x4f7   :  { %v1347_v60 = vsel %vm4049_vm2, %v3594_v40, 0.0  ;;  %vm4064_vm2 = vmmov %vm4025_vm0 }
 0x4f8   :  { %2351 = vpow2.f32 %v1311_v26  ;;  %1348 = vadd.xlane.f32.xlu2 %v1347_v60  ;;  %1273 = vmax.xlane.f32.xlu0 %v1272_v42  ;;  %vm4074_vm4 = vmmov %vm4025_vm0 }
 0x4f9   :  { %2267 = vmatpush.xpose.msk.msrb.mxu1 %vm4060_vm10, %v217_v28  ;;  %2298 = vmatpush.xpose.msk.msra.mxu3 %vm4069_vm5, %v202_v34  ;;  %vm4075_vm10 = vmmov %vm4025_vm0 }
 0x4fa   :  { %vm4084_vm5 = vmmov %vm4025_vm0 }
 0x4fc   :  { %v3632_v30 = vpop.f32.mrf.mxu0 }
 0x4fd   :  { %2268 = vmatpush.xpose.msk.msrb.mxu1 %vm4061_vm1, %v208_v63  ;;  %v1278_v8 = vsel %vm4062_vm13, %v3632_v30, -inf  ;;  %v201_v63 = vsel %vm4070_vm8, 1.0, %v4007_v39  ;;  %vm4076_vm1 = vmmov %vm4025_vm0 }
 0x4fe   :  { %v3618_v15 = vpop.eup %2351  ;;  %vm4077_vm13 = vmmov %vm4025_vm0 }
 0x4ff   :  { %v1350_v44 = vsel %vm4057_vm7, %v3618_v15, 0.0  ;;  %vm4072_vm7 = vmmov %vm4025_vm0 }
 0x500   :  { %1351 = vadd.xlane.f32.xlu1 %v1350_v44  ;;  %1276 = vmax.xlane.f32.xlu2 %v1275_v1  ;;  %vm4085_vm8 = vmmov %vm4025_vm0 }
 0x501   :  { %2269 = vmatpush.xpose.msk.msrb.mxu1 %vm4063_vm11, %v207_v5  ;;  %2299 = vmatpush.xpose.msk.msra.mxu3 %vm4072_vm7, %v201_v63  ;;  %vm4078_vm11 = vmmov %vm4025_vm0 }
 0x502   :  { %vm4087_vm7 = vmmov %vm4025_vm0 }
 0x505   :  { %2270 = vmatpush.xpose.msk.msrb.mxu1 %vm4064_vm2, %v206_v51  ;;  %vm4079_vm2 = vmmov %vm4025_vm0 }
 0x508   :  { %1279 = vmax.xlane.f32.xlu1 %v1278_v8 }
 0x509   :  { %2271 = vmatpush.xpose.msk.msrb.mxu1 %vm4065_vm14, %v205_v46  ;;  %vm4080_vm14 = vmmov %vm4025_vm0 }
 0x50d   :  { %2272 = vmatpush.xpose.msk.msrb.mxu1 %vm4025_vm0, %v204_v38 }
 0x511   :  { %2273 = vmatpush.xpose.msk.msrb.mxu1 %vm4066_vm9, %v203_v56  ;;  %vm4081_vm9 = vmmov %vm4025_vm0 }
 0x515   :  { %2274 = vmatpush.xpose.msk.msrb.mxu1 %vm4068_vm3, %v202_v34  ;;  %vm4083_vm3 = vmmov %vm4025_vm0 }
 0x519   :  { %2275 = vmatpush.xpose.msk.msrb.mxu1 %vm4071_vm15, %v201_v63  ;;  %vm4086_vm15 = vmmov %vm4025_vm0 }
 0x53b   :  { %v1331_v5 = vpop.xlane.xlu2 %1330 }
 0x53c   :  { %2353 = vrcp.f32 %v1331_v5 }
 0x542   :  { %v2354_v57 = vpop.eup %2353 }
 0x543   :  { %v1393_v51 = vmul.f32 %v2354_v57, %v3516_v31  ;;  %v1334_v19 = vpop.xlane.xlu1 %1333  ;;  %v1259_v9 = vpop.xlane.xlu2 %1258 }
 0x544   :  { %2355 = vrcp.f32 %v1334_v19  ;;  %v1289_v33 = vsub.f32 %v3514_v48, %v1259_v9 }
 0x545   :  { %2276 = vmatmul.msk.f32.vlgmr.msrb.gmra.mxu1 %vm4073_vm12, %v1393_v51  ;;  %vm4088_vm12 = vmmov %vm4025_vm0 }
 0x546   :  { %v1313_v26 = vmul.f32 1.442695, %v1289_v33 }
 0x548   :  { %2357 = vpow2.f32 %v1313_v26 }
 0x54a   :  { %v2356_v10 = vpop.eup %2355 }
 0x54b   :  { %v1337_v39 = vpop.xlane.xlu0 %1336  ;;  %v1262_v37 = vpop.xlane.xlu1 %1261  ;;  %v1394_v46 = vmul.f32 %v2356_v10, %v3522_v14 }
 0x54c   :  { %2359 = vrcp.f32 %v1337_v39  ;;  %v1290_v60 = vsub.f32 %v3520_v6, %v1262_v37 }
 0x54d   :  { %2277 = vmatmul.msk.f32.gmra.mxu1 %vm4074_vm4, %v1394_v46  ;;  %vm4089_vm4 = vmmov %vm4025_vm0 }
 0x54e   :  { %v3658_v31 = vpop.eup %2357  ;;  %v1315_v42 = vmul.f32 1.442695, %v1290_v60 }
 0x54f   :  { %v1353_v48 = vsel %vm4075_vm10, %v3658_v31, 0.0  ;;  %vm4090_vm10 = vmmov %vm4025_vm0 }
 0x550   :  { %2361 = vpow2.f32 %v1315_v42  ;;  %1354 = vadd.xlane.f32.xlu0 %v1353_v48 }
 0x552   :  { %v2360_v0 = vpop.eup %2359 }
 0x553   :  { %v1340_v38 = vpop.xlane.xlu2 %1339  ;;  %v1265_v28 = vpop.xlane.xlu0 %1264  ;;  %v1395_v56 = vmul.f32 %v2360_v0, %v3530_v13 }
 0x554   :  { %2363 = vrcp.f32 %v1340_v38  ;;  %v1291_v14 = vsub.f32 %v3528_v16, %v1265_v28 }
 0x555   :  { %2278 = vmatmul.msk.f32.gmra.mxu1 %vm4076_vm1, %v1395_v56  ;;  %vm4091_vm1 = vmmov %vm4025_vm0 }
 0x556   :  { %v3665_v6 = vpop.eup %2361  ;;  %v1317_v44 = vmul.f32 1.442695, %v1291_v14 }
 0x557   :  { %v1356_v1 = vsel %vm4077_vm13, %v3665_v6, 0.0  ;;  %vm4092_vm13 = vmmov %vm4025_vm0 }
 0x558   :  { %2365 = vpow2.f32 %v1317_v44  ;;  %1357 = vadd.xlane.f32.xlu2 %v1356_v1 }
 0x55a   :  { %v2364_v8 = vpop.eup %2363 }
 0x55b   :  { %v1343_v34 = vpop.xlane.xlu1 %1342  ;;  %v1268_v63 = vpop.xlane.xlu2 %1267  ;;  %v1396_v5 = vmul.f32 %v2364_v8, %v3538_v3 }
 0x55c   :  { %2367 = vrcp.f32 %v1343_v34  ;;  %v1292_v13 = vsub.f32 %v3536_v35, %v1268_v63 }
 0x55d   :  { %2279 = vmatmul.msk.f32.gmra.mxu1 %vm4078_vm11, %v1396_v5  ;;  %vm4093_vm11 = vmmov %vm4025_vm0 }
 0x55e   :  { %v3672_v16 = vpop.eup %2365  ;;  %v1319_v57 = vmul.f32 1.442695, %v1292_v13 }
 0x55f   :  { %v1359_v51 = vsel %vm4079_vm2, %v3672_v16, 0.0  ;;  %vm4094_vm2 = vmmov %vm4025_vm0 }
 0x560   :  { %2369 = vpow2.f32 %v1319_v57  ;;  %1360 = vadd.xlane.f32.xlu0 %v1359_v51 }
 0x562   :  { %v2368_v19 = vpop.eup %2367 }
 0x563   :  { %v1346_v9 = vpop.xlane.xlu0 %1345  ;;  %v1271_v33 = vpop.xlane.xlu1 %1270  ;;  %v1397_v26 = vmul.f32 %v2368_v19, %v3548_v11 }
 0x564   :  { %2371 = vrcp.f32 %v1346_v9  ;;  %v1293_v3 = vsub.f32 %v3550_v17, %v1271_v33 }
 0x565   :  { %2280 = vmatmul.msk.f32.gmra.mxu1 %vm4080_vm14, %v1397_v26  ;;  %vm4095_vm14 = vmmov %vm4025_vm0 }
 0x566   :  { %v3679_v35 = vpop.eup %2369  ;;  %v1321_v10 = vmul.f32 1.442695, %v1293_v3 }
 0x567   :  { %v1362_v39 = vsel %vm4025_vm0, %v3679_v35, 0.0 }
 0x568   :  { %2373 = vpow2.f32 %v1321_v10  ;;  %1363 = vadd.xlane.f32.xlu1 %v1362_v39 }
 0x56a   :  { %v2372_v37 = vpop.eup %2371 }
 0x56b   :  { %v1349_v46 = vpop.xlane.xlu2 %1348  ;;  %v1274_v60 = vpop.xlane.xlu0 %1273  ;;  %v1398_v42 = vmul.f32 %v2372_v37, %v3569_v7 }
 0x56c   :  { %2375 = vrcp.f32 %v1349_v46  ;;  %v1294_v11 = vsub.f32 %v3582_v47, %v1274_v60 }
 0x56d   :  { %2281 = vmatmul.msk.f32.gmra.mxu1 %vm4081_vm9, %v1398_v42  ;;  %vm4096_vm9 = vmmov %vm4025_vm0 }
 0x56e   :  { %v3686_v17 = vpop.eup %2373  ;;  %v1323_v48 = vmul.f32 1.442695, %v1294_v11 }
 0x56f   :  { %v1365_v0 = vsel %vm4082_vm6, %v3686_v17, 0.0  ;;  %vm4097_vm6 = vmmov %vm4025_vm0 }
 0x570   :  { %2377 = vpow2.f32 %v1323_v48  ;;  %1366 = vadd.xlane.f32.xlu2 %v1365_v0 }
 0x572   :  { %v2376_v38 = vpop.eup %2375 }
 0x573   :  { %v1352_v28 = vpop.xlane.xlu1 %1351  ;;  %v1277_v56 = vpop.xlane.xlu2 %1276  ;;  %v1399_v14 = vmul.f32 %v2376_v38, %v3594_v40 }
 0x574   :  { %2379 = vrcp.f32 %v1352_v28  ;;  %v1295_v7 = vsub.f32 %v3608_v29, %v1277_v56 }
 0x575   :  { %2282 = vmatmul.msk.f32.gmra.mxu1 %vm4083_vm3, %v1399_v14  ;;  %vm4098_vm3 = vmmov %vm4025_vm0 }
 0x576   :  { %v3693_v47 = vpop.eup %2377  ;;  %v1325_v44 = vmul.f32 1.442695, %v1295_v7 }
 0x577   :  { %v1368_v1 = vsel %vm4084_vm5, %v3693_v47, 0.0  ;;  %vm4099_vm5 = vmmov %vm4025_vm0 }
 0x578   :  { %2381 = vpow2.f32 %v1325_v44  ;;  %1369 = vadd.xlane.f32.xlu0 %v1368_v1 }
 0x57a   :  { %v2380_v8 = vpop.eup %2379 }
 0x57b   :  { %v1280_v34 = vpop.xlane.xlu1 %1279  ;;  %v1400_v63 = vmul.f32 %v2380_v8, %v3618_v15 }
 0x57c   :  { %v1296_v5 = vsub.f32 %v3632_v30, %v1280_v34 }
 0x57d   :  { %2283 = vmatmul.msk.f32.gmra.mxu1 %vm4085_vm8, %v1400_v63  ;;  %vm4100_vm8 = vmmov %vm4025_vm0 }
 0x57e   :  { %v3700_v40 = vpop.eup %2381  ;;  %v1327_v29 = vmul.f32 1.442695, %v1296_v5 }
 0x57f   :  { %v1371_v13 = vsel %vm4086_vm15, %v3700_v40, 0.0  ;;  %vm4101_vm15 = vmmov %vm4025_vm0 }
 0x580   :  { %2383 = vpow2.f32 %v1327_v29  ;;  %1372 = vadd.xlane.f32.xlu1 %v1371_v13 }
 0x586   :  { %v3704_v57 = vpop.eup %2383 }
 0x587   :  { %v1374_v51 = vsel %vm4087_vm7, %v3704_v57, 0.0  ;;  %vm4102_vm7 = vmmov %vm4025_vm0 }
 0x588   :  { %1375 = vadd.xlane.f32.xlu2 %v1374_v51 }
 0x5c2   :  { %v1522_v19 = vpop.f32.mrf.mxu1 }
 0x5c3   :  { %v1570_v15 = vmul.f32 %v1522_v19, %v3392_v59  ;;  %v1355_v30 = vpop.xlane.xlu0 %1354 }
 0x5c4   :  { %2385 = vrcp.f32 %v1355_v30 }
 0x5c5   :  { %1602 = vmatmul.f32.vlgmr.msra.gmra.mxu2 %v1570_v15 }
 0x5ca   :  { %v2386_v9 = vpop.eup %2385  ;;  %v1525_v33 = vpop.f32.mrf.mxu1 }
 0x5cb   :  { %v1571_v26 = vmul.f32 %v1525_v33, %v3399_v50  ;;  %v1358_v3 = vpop.xlane.xlu2 %1357  ;;  %v1401_v10 = vmul.f32 %v2386_v9, %v3658_v31 }
 0x5cc   :  { %2387 = vrcp.f32 %v1358_v3 }
 0x5cd   :  { %2284 = vmatmul.msk.f32.gmra.mxu1 %vm4088_vm12, %v1401_v10  ;;  %1605 = vmatmul.f32.gmra.mxu2 %v1571_v26  ;;  %vm4103_vm12 = vmmov %vm4025_vm0 }
 0x5d2   :  { %v2388_v39 = vpop.eup %2387  ;;  %v1528_v37 = vpop.f32.mrf.mxu1 }
 0x5d3   :  { %v1572_v46 = vmul.f32 %v1528_v37, %v3406_v54  ;;  %v1361_v60 = vpop.xlane.xlu0 %1360  ;;  %v1402_v59 = vmul.f32 %v2388_v39, %v3665_v6 }
 0x5d4   :  { %2389 = vrcp.f32 %v1361_v60 }
 0x5d5   :  { %2285 = vmatmul.msk.f32.gmra.mxu1 %vm4089_vm4, %v1402_v59  ;;  %1608 = vmatmul.f32.gmra.mxu2 %v1572_v46  ;;  %vm4104_vm4 = vmmov %vm4025_vm0 }
 0x5da   :  { %v2390_v42 = vpop.eup %2389  ;;  %v1531_v50 = vpop.f32.mrf.mxu1 }
 0x5db   :  { %v1573_v11 = vmul.f32 %v1531_v50, %v3413_v27  ;;  %v1364_v31 = vpop.xlane.xlu1 %1363  ;;  %v1403_v48 = vmul.f32 %v2390_v42, %v3672_v16 }
 0x5dc   :  { %2391 = vrcp.f32 %v1364_v31 }
 0x5dd   :  { %2286 = vmatmul.msk.f32.gmra.mxu1 %vm4090_vm10, %v1403_v48  ;;  %1611 = vmatmul.f32.gmra.mxu2 %v1573_v11  ;;  %vm4105_vm10 = vmmov %vm4025_vm0 }
 0x5e2   :  { %v2392_v0 = vpop.eup %2391  ;;  %v1534_v54 = vpop.f32.mrf.mxu1 }
 0x5e3   :  { %v1574_v38 = vmul.f32 %v1534_v54, %v3420_v12  ;;  %v1367_v6 = vpop.xlane.xlu2 %1366  ;;  %v1404_v28 = vmul.f32 %v2392_v0, %v3679_v35 }
 0x5e4   :  { %2393 = vrcp.f32 %v1367_v6 }
 0x5e5   :  { %2287 = vmatmul.msk.f32.gmra.mxu1 %vm4091_vm1, %v1404_v28  ;;  %1614 = vmatmul.f32.gmra.mxu2 %v1574_v38  ;;  %vm4106_vm1 = vmmov %vm4025_vm0 }
 0x5ea   :  { %v2394_v56 = vpop.eup %2393  ;;  %v1537_v27 = vpop.f32.mrf.mxu1 }
 0x5eb   :  { %v1575_v14 = vmul.f32 %v1537_v27, %v3427_v21  ;;  %v1370_v16 = vpop.xlane.xlu0 %1369  ;;  %v1405_v7 = vmul.f32 %v2394_v56, %v3686_v17 }
 0x5ec   :  { %2395 = vrcp.f32 %v1370_v16 }
 0x5ed   :  { %2288 = vmatmul.msk.f32.gmra.mxu1 %vm4092_vm13, %v1405_v7  ;;  %1617 = vmatmul.f32.gmra.mxu2 %v1575_v14  ;;  %vm4107_vm13 = vmmov %vm4025_vm0 }
 0x5f2   :  { %v2396_v44 = vpop.eup %2395  ;;  %v1540_v12 = vpop.f32.mrf.mxu1 }
 0x5f3   :  { %v1576_v1 = vmul.f32 %v1540_v12, %v3434_v25  ;;  %v1373_v35 = vpop.xlane.xlu1 %1372  ;;  %v1406_v8 = vmul.f32 %v2396_v44, %v3693_v47 }
 0x5f4   :  { %2397 = vrcp.f32 %v1373_v35 }
 0x5f5   :  { %2289 = vmatmul.msk.f32.gmra.mxu1 %vm4093_vm11, %v1406_v8  ;;  %1620 = vmatmul.f32.gmra.mxu2 %v1576_v1  ;;  %vm4108_vm11 = vmmov %vm4025_vm0 }
 0x5fa   :  { %v2398_v34 = vpop.eup %2397  ;;  %v1543_v21 = vpop.f32.mrf.mxu1 }
 0x5fb   :  { %v1577_v63 = vmul.f32 %v1543_v21, %v3441_v20  ;;  %v1376_v17 = vpop.xlane.xlu2 %1375  ;;  %v1407_v5 = vmul.f32 %v2398_v34, %v3700_v40 }
 0x5fc   :  { %2399 = vrcp.f32 %v1376_v17 }
 0x5fd   :  { %2290 = vmatmul.msk.f32.gmra.mxu1 %vm4094_vm2, %v1407_v5  ;;  %1623 = vmatmul.f32.gmra.mxu2 %v1577_v63  ;;  %vm4109_vm2 = vmmov %vm4025_vm0 }
 0x602   :  { %v2400_v29 = vpop.eup %2399 }
 0x603   :  { %v1408_v25 = vmul.f32 %v2400_v29, %v3704_v57 }
 0x605   :  { %2291 = vmatmul.msk.f32.gmra.mxu1 %vm4095_vm14, %v1408_v25  ;;  %vm4110_vm14 = vmmov %vm4025_vm0  ;;  %v1810_v25 = vld [vmem:[%s3899_s2 + $0x38] sm:$0xff] }
 0x606   :  { %1826 = vmatpush.msra.mxu1 %v1810_v25  ;;  %v1903_v25 = vld [vmem:[#allocation5 + $0x18] sm:$0xff] }
 0x648   :  { %v1603_v47 = vpop.f32.mrf.mxu2 }
 0x649   :  { %2300 = vmatmul.msk.f32.vlgmr.msra.gmra.mxu3 %vm4025_vm0, %v1603_v47 }
 0x64a   :  { %v1546_v13 = vpop.f32.mrf.mxu1 }
 0x64b   :  { %v1578_v51 = vmul.f32 %v1546_v13, %v3448_v49 }
 0x64d   :  { %1626 = vmatmul.f32.gmra.mxu2 %v1578_v51 }
 0x650   :  { %v1606_v20 = vpop.f32.mrf.mxu2 }
 0x651   :  { %2301 = vmatmul.msk.f32.gmra.mxu3 %vm4096_vm9, %v1606_v20  ;;  %v4111_v20 = vld [vmem:[#allocation20_spill] sm:$0xff] }
 0x652   :  { %v1549_v40 = vpop.f32.mrf.mxu1 }
 0x653   :  { %v1579_v19 = vmul.f32 %v1549_v40, %v3455_v22 }
 0x655   :  { %1629 = vmatmul.f32.gmra.mxu2 %v1579_v19  ;;  %v4112_v19 = vld [vmem:[#allocation19_spill] sm:$0xff] }
 0x658   :  { %v1609_v15 = vpop.f32.mrf.mxu2 }
 0x659   :  { %2302 = vmatmul.msk.f32.gmra.mxu3 %vm4097_vm6, %v1609_v15  ;;  %v4113_v15 = vld [vmem:[#allocation18_spill] sm:$0xff]  ;;  %vm4121_vm6 = vcmask 523264  }
 0x65a   :  { %v1552_v57 = vpop.f32.mrf.mxu1 }
 0x65b   :  { %v1580_v30 = vmul.f32 %v1552_v57, %v3462_v24 }
 0x65d   :  { %1632 = vmatmul.f32.gmra.mxu2 %v1580_v30  ;;  %v4114_v30 = vld [vmem:[#allocation17_spill] sm:$0xff] }
 0x660   :  { %v1612_v9 = vpop.f32.mrf.mxu2 }
 0x661   :  { %2303 = vmatmul.msk.f32.gmra.mxu3 %vm4098_vm3, %v1612_v9  ;;  %vm4122_vm3 = vmmov %vm4121_vm6 }
 0x662   :  { %v1555_v33 = vpop.f32.mrf.mxu1 }
 0x663   :  { %v1581_v49 = vmul.f32 %v1555_v33, %v3469_v36 }
 0x665   :  { %1635 = vmatmul.f32.gmra.mxu2 %v1581_v49  ;;  %v4116_v49 = vld [vmem:[#allocation15_spill] sm:$0xff] }
 0x668   :  { %v1615_v26 = vpop.f32.mrf.mxu2 }
 0x669   :  { %2304 = vmatmul.msk.f32.gmra.mxu3 %vm4099_vm5, %v1615_v26  ;;  %vm4123_vm5 = vmmov %vm4122_vm3 }
 0x66a   :  { %v1558_v3 = vpop.f32.mrf.mxu1 }
 0x66b   :  { %v1582_v22 = vmul.f32 %v1558_v3, %v3476_v45  ;;  %v4117_v3 = vld [vmem:[#allocation14_spill] sm:$0xff] }
 0x66d   :  { %1638 = vmatmul.f32.gmra.mxu2 %v1582_v22  ;;  %v4118_v22 = vld [vmem:[#allocation12_spill] sm:$0xff] }
 0x66e   :  { %vm141_vm0 = vcmp.eq.s32.totalorder %v4118_v22, %v4117_v3 }
 0x670   :  { %v1618_v10 = vpop.f32.mrf.mxu2 }
 0x671   :  { %2305 = vmatmul.msk.f32.gmra.mxu3 %vm4100_vm8, %v1618_v10  ;;  %v4119_v10 = vmov 1.0   ;;  %vm4124_vm8 = vmmov %vm4122_vm3 }
 0x672   :  { %v1561_v39 = vpop.f32.mrf.mxu1 }
 0x673   :  { %v1583_v24 = vmul.f32 %v1561_v39, %v3483_v52  ;;  %v4120_v39 = vld [vmem:[#allocation13_spill] sm:$0xff] }
 0x674   :  { %vm142_vm9 = vcmp.eq.s32.totalorder %v4120_v39, %v4117_v3 }
 0x675   :  { %1641 = vmatmul.f32.gmra.mxu2 %v1583_v24  ;;  %v1803_v24 = vld [vmem:[%s3899_s2] sm:$0xff] }
 0x678   :  { %v1621_v37 = vpop.f32.mrf.mxu2 }
 0x679   :  { %2306 = vmatmul.msk.f32.gmra.mxu3 %vm4101_vm15, %v1621_v37 }
 0x67a   :  { %v1564_v46 = vpop.f32.mrf.mxu1 }
 0x67b   :  { %v1584_v36 = vmul.f32 %v1564_v46, %v3490_v53 }
 0x67d   :  { %1644 = vmatmul.f32.gmra.mxu2 %v1584_v36  ;;  %v3804_v36 = vld [vmem:[#allocation7] sm:$0xff] }
 0x680   :  { %v1624_v60 = vpop.f32.mrf.mxu2 }
 0x681   :  { %2307 = vmatmul.msk.f32.gmra.mxu3 %vm4102_vm7, %v1624_v60  ;;  %v1811_v60 = vperm.slane %v3804_v36, 1  ;;  %vm4125_vm7 = vmmov %vm4122_vm3 }
 0x682   :  { %v1567_v59 = vpop.f32.mrf.mxu1 }
 0x683   :  { %v1585_v45 = vmul.f32 %v1567_v59, %v3497_v4 }
 0x685   :  { %1647 = vmatmul.f32.gmra.mxu2 %v1585_v45 }
 0x6cc   :  { %v1716_v48 = vpop.f32.mrf.mxu3 }
 0x6cd   :  { %v1764_v26 = vmul.f32 %v1716_v48, %v4116_v49 }
 0x6d0   :  { %v1627_v42 = vpop.f32.mrf.mxu2 }
 0x6d1   :  { %2308 = vmatmul.msk.f32.gmra.mxu3 %vm4103_vm12, %v1627_v42  ;;  %v2420_v42 = vld [vmem:[#allocation2] sm:$0xff]  ;;  %vm4126_vm12 = vmmov %vm4122_vm3 }
 0x6d4   :  { %v1719_v54 = vpop.f32.mrf.mxu3 }
 0x6d8   :  { %v1630_v50 = vpop.f32.mrf.mxu2 }
 0x6d9   :  { %2309 = vmatmul.msk.f32.gmra.mxu3 %vm4104_vm4, %v1630_v50 }
 0x6dc   :  { %v1722_v38 = vpop.f32.mrf.mxu3 }
 0x6dd   :  { %v1766_v9 = vmul.f32 %v1722_v38, %v4114_v30  ;;  %v1894_v30 = vperm.slane %v3804_v36, 2 }
 0x6e0   :  { %v1633_v52 = vpop.f32.mrf.mxu2 }
 0x6e1   :  { %2310 = vmatmul.msk.f32.gmra.mxu3 %vm4105_vm10, %v1633_v52 }
 0x6e4   :  { %v1725_v6 = vpop.f32.mrf.mxu3 }
 0x6e5   :  { %v1767_v57 = vmul.f32 %v1725_v6, %v4113_v15 }
 0x6e8   :  { %v1636_v11 = vpop.f32.mrf.mxu2 }
 0x6e9   :  { %2311 = vmatmul.msk.f32.gmra.mxu3 %vm4106_vm1, %v1636_v11 }
 0x6ec   :  { %v1728_v28 = vpop.f32.mrf.mxu3 }
 0x6f0   :  { %v1639_v53 = vpop.f32.mrf.mxu2 }
 0x6f1   :  { %2312 = vmatmul.msk.f32.gmra.mxu3 %vm4107_vm13, %v1639_v53 }
 0x6f4   :  { %v1731_v56 = vpop.f32.mrf.mxu3 }
 0x6f5   :  { %v1769_v40 = vmul.f32 %v1731_v56, %v4111_v20 }
 0x6f8   :  { %v1642_v31 = vpop.f32.mrf.mxu2 }
 0x6f9   :  { %2313 = vmatmul.msk.f32.gmra.mxu3 %vm4108_vm11, %v1642_v31  ;;  %v2421_v31 = vld [vmem:[#allocation2 + $0x8] sm:$0xff] }
 0x6fc   :  { %v1734_v27 = vpop.f32.mrf.mxu3 }
 0x6fd   :  { %v1770_v51 = vmul.f32 %v1734_v27, %v2779_v58  ;;  %v4115_v58 = vld [vmem:[#allocation16_spill] sm:$0xff] }
 0x6fe   :  { %v1765_v33 = vmul.f32 %v1719_v54, %v4115_v58 }
 0x700   :  { %v1645_v4 = vpop.f32.mrf.mxu2 }
 0x701   :  { %2314 = vmatmul.msk.f32.gmra.mxu3 %vm4109_vm2, %v1645_v4 }
 0x704   :  { %v1737_v14 = vpop.f32.mrf.mxu3 }
 0x705   :  { %v1771_v13 = vmul.f32 %v1737_v14, %v2965_v55  ;;  %v1768_v55 = vmul.f32 %v1728_v28, %v4112_v19 }
 0x708   :  { %v1648_v0 = vpop.f32.mrf.mxu2 }
 0x709   :  { %2315 = vmatmul.msk.f32.gmra.mxu3 %vm4110_vm14, %v1648_v0  ;;  %v2532_v0 = vmov 64.0   ;;  %vm4127_vm14 = vmmov %vm4122_vm3 }
 0x70a   :  { %2401 = vrcp.f32 %v2532_v0 }
 0x710   :  { %v2402_v54 = vpop.eup %2401 }
 0x711   :  { %v1850_v38 = vmul.f32 64.0, %v2402_v54  ;;  %vm1854_vm15 = vweird.f32 %v2402_v54 }
 0x713   :  { %v1851_v6 = vsub.f32 1.0, %v1850_v38  ;;  %v1996_v38 = vld [vmem:[%s3901_s4 + $0x30] sm:$0xff] }
 0x715   :  { %v1852_v28 = vmul.f32 %v2402_v54, %v1851_v6 }
 0x717   :  { %v1853_v56 = vadd.f32 %v2402_v54, %v1852_v28  ;;  %v1995_v28 = vld [vmem:[%s3901_s4 + $0x28] sm:$0xff] }
 0x719   :  { %v3809_v27 = vsel %vm1854_vm15, %v2402_v54, %v1853_v56 }
 0x754   :  { %v1740_v16 = vpop.f32.mrf.mxu3 }
 0x755   :  { %v1772_v47 = vmul.f32 %v1740_v16, %v3007_v18  ;;  %v1804_v18 = vld [vmem:[%s3899_s2 + $0x8] sm:$0xff] }
 0x75c   :  { %v1743_v7 = vpop.f32.mrf.mxu3 }
 0x764   :  { %v1746_v44 = vpop.f32.mrf.mxu3 }
 0x76c   :  { %v1749_v12 = vpop.f32.mrf.mxu3 }
 0x76d   :  { %v1775_v29 = vmul.f32 %v1749_v12, %v3079_v43  ;;  %v1807_v43 = vld [vmem:[%s3899_s2 + $0x20] sm:$0xff] }
 0x774   :  { %v1752_v1 = vpop.f32.mrf.mxu3 }
 0x775   :  { %v1776_v5 = vmul.f32 %v1752_v1, %v3099_v2  ;;  %v1808_v2 = vld [vmem:[%s3899_s2 + $0x28] sm:$0xff] }
 0x77c   :  { %v1755_v35 = vpop.f32.mrf.mxu3 }
 0x77d   :  { %v1777_v17 = vmul.f32 %v1755_v35, %v3124_v23  ;;  %v1773_v23 = vmul.f32 %v1743_v7, %v3049_v61  ;;  %v1805_v61 = vld [vmem:[%s3899_s2 + $0x10] sm:$0xff] }
 0x784   :  { %v1758_v8 = vpop.f32.mrf.mxu3 }
 0x785   :  { %v1778_v63 = vmul.f32 %v1758_v8, %v3159_v32  ;;  %v1774_v32 = vmul.f32 %v1746_v44, %v3052_v62  ;;  %v1806_v62 = vld [vmem:[%s3899_s2 + $0x18] sm:$0xff] }
 0x78c   :  { %v1761_v34 = vpop.f32.mrf.mxu3 }
 0x78d   :  { %v1779_v21 = vmul.f32 %v1761_v34, %v3141_v41  ;;  %v1809_v41 = vld [vmem:[%s3899_s2 + $0x30] sm:$0xff] }
 0x78e   :  { %1827 = vmatpush.msra.mxu1 %v1809_v41  ;;  %v1902_v41 = vld [vmem:[#allocation5 + $0x10] sm:$0xff] }
 0x78f   :  { %1780 = vmatpush.msra.mxu0 %v1779_v21 }
 0x790   :  { %1828 = vmatpush.msra.mxu1 %v1808_v2  ;;  %v1900_v2 = vld [vmem:[#allocation5] sm:$0xff] }
 0x791   :  { %1781 = vmatpush.msra.mxu0 %v1778_v63  ;;  %v1907_v63 = vld [vmem:[#allocation5 + $0x38] sm:$0xff] }
 0x792   :  { %1829 = vmatpush.msra.mxu1 %v1807_v43 }
 0x793   :  { %1782 = vmatpush.msra.mxu0 %v1777_v17  ;;  %v1906_v17 = vld [vmem:[#allocation5 + $0x30] sm:$0xff] }
 0x794   :  { %1830 = vmatpush.msra.mxu1 %v1806_v62 }
 0x795   :  { %1783 = vmatpush.msra.mxu0 %v1776_v5  ;;  %v1905_v5 = vld [vmem:[#allocation5 + $0x28] sm:$0xff] }
 0x796   :  { %1831 = vmatpush.msra.mxu1 %v1805_v61 }
 0x797   :  { %1784 = vmatpush.msra.mxu0 %v1775_v29  ;;  %v1904_v29 = vld [vmem:[#allocation5 + $0x20] sm:$0xff] }
 0x798   :  { %1832 = vmatpush.msra.mxu1 %v1804_v18 }
 0x799   :  { %1785 = vmatpush.msra.mxu0 %v1774_v32  ;;  %v1901_v32 = vld [vmem:[#allocation5 + $0x8] sm:$0xff] }
 0x79a   :  { %1833 = vmatpush.msra.mxu1 %v1803_v24 }
 0x79b   :  { %1786 = vmatpush.msra.mxu0 %v1773_v23 }
 0x79d   :  { %1787 = vmatpush.msra.mxu0 %v1772_v47 }
 0x79f   :  { %1788 = vmatpush.msra.mxu0 %v1771_v13 }
 0x7a1   :  { %1789 = vmatpush.msra.mxu0 %v1770_v51 }
 0x7a3   :  { %1790 = vmatpush.msra.mxu0 %v1769_v40 }
 0x7a5   :  { %1791 = vmatpush.msra.mxu0 %v1768_v55 }
 0x7a7   :  { %1792 = vmatpush.msra.mxu0 %v1767_v57 }
 0x7a9   :  { %1793 = vmatpush.msra.mxu0 %v1766_v9 }
 0x7ab   :  { %1794 = vmatpush.msra.mxu0 %v1765_v33  ;;  %v1897_v33 = vperm.slane %v3804_v36, 3 }
 0x7ad   :  { %1795 = vmatpush.msra.mxu0 %v1764_v26 }
 0x7ae   :  { %2316 = vmatmul.msk.f32.vlgmr.msra.gmra.mxu0 %vm141_vm0, %v4119_v10  ;;  %vm4128_vm0 = vmmov %vm4122_vm3 }
 0x7af   :  { %1923 = vmatpush.msrb.mxu0 %v1907_v63  ;;  %vm4132_vm15 = vmmov %vm4128_vm0 }
 0x7b1   :  { %1924 = vmatpush.msrb.mxu0 %v1906_v17 }
 0x7b3   :  { %1925 = vmatpush.msrb.mxu0 %v1905_v5 }
 0x7b5   :  { %1926 = vmatpush.msrb.mxu0 %v1904_v29 }
 0x7b6   :  { %2317 = vmatmul.msk.f32.gmra.mxu0 %vm142_vm9, %v4119_v10 }
 0x7b7   :  { %1927 = vmatpush.msrb.mxu0 %v1903_v25 }
 0x7b9   :  { %1928 = vmatpush.msrb.mxu0 %v1902_v41 }
 0x7bb   :  { %1929 = vmatpush.msrb.mxu0 %v1901_v32 }
 0x7bd   :  { %1930 = vmatpush.msrb.mxu0 %v1900_v2 }
 0x82b   :  { %v1797_v37 = vpop.f32.mrf.mxu0 }
 0x82c   :  { %2318 = vmatmul.msk.f32.vlgmr.msra.gmra.mxu1 %vm4121_vm6, %v1797_v37 }
 0x833   :  { %v1800_v46 = vpop.f32.mrf.mxu0 }
 0x834   :  { %2319 = vmatmul.msk.f32.gmra.mxu1 %vm4122_vm3, %v1800_v46  ;;  %vm4129_vm3 = vmmov %vm4128_vm0 }
 0x8a9   :  { %v1835_v59 = vpop.f32.mrf.mxu1 }
 0x8aa   :  { %v1836_v45 = vadd.f32 %v1835_v59, %v1811_v60  ;;  %v2005_v59 = vld [vmem:[%s3901_s4 + $0x78] sm:$0xff] }
 0x8ab   :  { %2007 = vmatpush.msrb.mxu1 %v2005_v59 }
 0x8ac   :  { %v1841_v50 = vadd.f32 %v2420_v42, %v1836_v45  ;;  %v2004_v45 = vld [vmem:[%s3901_s4 + $0x70] sm:$0xff]  ;;  %v2003_v42 = vld [vmem:[%s3901_s4 + $0x68] sm:$0xff] }
 0x8ad   :  { %2008 = vmatpush.msrb.mxu1 %v2004_v45 }
 0x8ae   :  { %v1843_v52 = vsel %vm4123_vm5, %v1841_v50, 0.0  ;;  %vm4130_vm5 = vmmov %vm4128_vm0 }
 0x8af   :  { %1844 = vadd.xlane.f32.xlu0 %v1843_v52  ;;  %2009 = vmatpush.msrb.mxu1 %v2003_v42  ;;  %v2001_v52 = vld [vmem:[%s3901_s4 + $0x58] sm:$0xff] }
 0x8b1   :  { %v1838_v11 = vpop.f32.mrf.mxu1 }
 0x8b2   :  { %v1839_v53 = vadd.f32 %v1838_v11, %v1811_v60  ;;  %v2000_v11 = vld [vmem:[%s3901_s4 + $0x50] sm:$0xff] }
 0x8b4   :  { %v1842_v4 = vadd.f32 %v2421_v31, %v1839_v53  ;;  %v1999_v53 = vld [vmem:[%s3901_s4 + $0x48] sm:$0xff]  ;;  %v1908_v31 = vperm.slane %v3804_v36, 4 }
 0x8b6   :  { %v1846_v48 = vsel %vm4124_vm8, %v1842_v4, 0.0  ;;  %vm4131_vm8 = vmmov %vm4128_vm0 }
 0x8b7   :  { %1847 = vadd.xlane.f32.xlu1 %v1846_v48  ;;  %v1997_v48 = vld [vmem:[%s3901_s4 + $0x38] sm:$0xff] }
 0x922   :  { %v1845_v14 = vpop.xlane.xlu0 %1844 }
 0x923   :  { %v1856_v16 = vmul.f32 %v3809_v27, %v1845_v14  ;;  %v1994_v14 = vld [vmem:[%s3901_s4 + $0x20] sm:$0xff] }
 0x925   :  { %v1858_v7 = vsub.f32 %v1841_v50, %v1856_v16  ;;  %v2002_v50 = vld [vmem:[%s3901_s4 + $0x60] sm:$0xff] }
 0x926   :  { %2010 = vmatpush.msrb.mxu1 %v2002_v50 }
 0x927   :  { %v1860_v44 = vmul.f32 %v1858_v7, %v1858_v7 }
 0x928   :  { %2011 = vmatpush.msrb.mxu1 %v2001_v52 }
 0x929   :  { %v1862_v12 = vsel %vm4125_vm7, %v1860_v44, 0.0 }
 0x92a   :  { %1863 = vadd.xlane.f32.xlu2 %v1862_v12  ;;  %v1848_v1 = vpop.xlane.xlu1 %1847  ;;  %2012 = vmatpush.msrb.mxu1 %v2000_v11 }
 0x92b   :  { %v1857_v35 = vmul.f32 %v3809_v27, %v1848_v1 }
 0x92c   :  { %2013 = vmatpush.msrb.mxu1 %v1999_v53 }
 0x92d   :  { %v1859_v8 = vsub.f32 %v1842_v4, %v1857_v35  ;;  %v1998_v4 = vld [vmem:[%s3901_s4 + $0x40] sm:$0xff]  ;;  %v1992_v35 = vld [vmem:[%s3901_s4 + $0x10] sm:$0xff] }
 0x92e   :  { %2014 = vmatpush.msrb.mxu1 %v1998_v4 }
 0x92f   :  { %v1861_v34 = vmul.f32 %v1859_v8, %v1859_v8 }
 0x930   :  { %2015 = vmatpush.msrb.mxu1 %v1997_v48 }
 0x931   :  { %v1865_v21 = vsel %vm4126_vm12, %v1861_v34, 0.0  ;;  %v1991_v34 = vld [vmem:[%s3901_s4 + $0x8] sm:$0xff] }
 0x932   :  { %1866 = vadd.xlane.f32.xlu0 %v1865_v21  ;;  %2016 = vmatpush.msrb.mxu1 %v1996_v38  ;;  %v1990_v21 = vld [vmem:[%s3901_s4] sm:$0xff] }
 0x934   :  { %2017 = vmatpush.msrb.mxu1 %v1995_v28 }
 0x936   :  { %2018 = vmatpush.msrb.mxu1 %v1994_v14 }
 0x99d   :  { %v1864_v23 = vpop.xlane.xlu2 %1863 }
 0x99e   :  { %v1868_v43 = vmul.f32 %v1864_v23, %v3809_v27 }
 0x9a0   :  { %v1870_v47 = vadd.f32 1e-05, %v1868_v43 }
 0x9a2   :  { %2403 = vrsqrt.f32 %v1870_v47  ;;  %vm1878_vm10 = vweird.f32 %v1870_v47 }
 0x9a5   :  { %v1867_v62 = vpop.xlane.xlu0 %1866 }
 0x9a6   :  { %v1869_v13 = vmul.f32 %v1867_v62, %v3809_v27 }
 0x9a8   :  { %v2404_v61 = vpop.eup %2403  ;;  %v1871_v51 = vadd.f32 1e-05, %v1869_v13 }
 0x9a9   :  { %v1873_v18 = vmul.f32 %v2404_v61, %v1870_v47  ;;  %vm1879_vm4 = vweird.f32 %v2404_v61 }
 0x9aa   :  { %2405 = vrsqrt.f32 %v1871_v51  ;;  %vm1880_vm1 = vmor %vm1878_vm10, %vm1879_vm4  ;;  %vm1888_vm11 = vweird.f32 %v1871_v51 }
 0x9ab   :  { %v1874_v20 = vmul.f32 %v2404_v61, %v1873_v18 }
 0x9ad   :  { %v1875_v40 = vmul.f32 0.5, %v1874_v20 }
 0x9af   :  { %v1876_v19 = vsub.f32 1.5, %v1875_v40 }
 0x9b0   :  { %v2406_v55 = vpop.eup %2405 }
 0x9b1   :  { %v1877_v15 = vmul.f32 %v2404_v61, %v1876_v19  ;;  %v1883_v57 = vmul.f32 %v2406_v55, %v1871_v51  ;;  %vm1889_vm13 = vweird.f32 %v2406_v55 }
 0x9b2   :  { %vm1890_vm2 = vmor %vm1888_vm11, %vm1889_vm13 }
 0x9b3   :  { %v1881_v9 = vsel %vm1880_vm1, %v2404_v61, %v1877_v15  ;;  %v1884_v58 = vmul.f32 %v2406_v55, %v1883_v57  ;;  %vm4133_vm11 = vmmov %vm4128_vm0 }
 0x9b4   :  { %v1892_v49 = vmul.f32 %v1881_v9, %v1858_v7  ;;  %v1993_v7 = vld [vmem:[%s3901_s4 + $0x18] sm:$0xff]  ;;  %s2534_s4 = smov [#allocation8]  }
 0x9b5   :  { %v1885_v26 = vmul.f32 0.5, %v1884_v58  ;;  %2019 = vmatpush.msrb.mxu1 %v1993_v7  ;;  %s2088_s14 = sshll.u32 %s2534_s4, 4  ;;  %s2089_s14 = int_to_ptr.vmem [resolvable:$true] %s2088_s14 }
 0x9b6   :  { %v1895_v3 = vmul.f32 %v1894_v30, %v1892_v49 }
 0x9b7   :  { %v1886_v22 = vsub.f32 1.5, %v1885_v26  ;;  %2020 = vmatpush.msrb.mxu1 %v1992_v35 }
 0x9b8   :  { %v3819_v10 = vadd.f32 %v1897_v33, %v1895_v3 }
 0x9b9   :  { %v1887_v39 = vmul.f32 %v2406_v55, %v1886_v22  ;;  %2021 = vmatpush.msrb.mxu1 %v1991_v34 }
 0x9ba   :  { %2320 = vmatmul.msk.f32.vlgmr.msrb.gmra.mxu0 %vm4127_vm14, %v3819_v10 }
 0x9bb   :  { %v1891_v24 = vsel %vm1890_vm2, %v2406_v55, %v1887_v39  ;;  %2022 = vmatpush.msrb.mxu1 %v1990_v21  ;;  %v2533_v39 = vmov -1.0   ;;  %vm4134_vm2 = vmmov %vm4128_vm0 }
 0x9bc   :  { %v1893_v37 = vmul.f32 %v1891_v24, %v1859_v8 }
 0x9be   :  { %v1896_v46 = vmul.f32 %v1894_v30, %v1893_v37 }
 0x9c0   :  { %v3823_v60 = vadd.f32 %v1897_v33, %v1896_v46 }
 0x9c2   :  { %2321 = vmatmul.msk.f32.gmra.mxu0 %vm4128_vm0, %v3823_v60 }
 0xa37   :  { %v1932_v0 = vpop.f32.mrf.mxu0 }
 0xa38   :  { %v1933_v54 = vadd.f32 %v1932_v0, %v1908_v31 }
 0xa3a   :  { %v1940_v6 = vmul.f32 0.70710677, %v1933_v54  ;;  %v1938_v59 = vmul.f32 0.5, %v1933_v54 }
 0xa3c   :  { %v1946_v56 = vand.u32 2147483647, %v1940_v6  ;;  %vm1942_vm9 = vcmp.ge.f32.partialorder %v1940_v6, 0.0  ;;  %v2006_v6 = vperm.slane %v3804_v36, 5 }
 0xa3d   :  { %v1944_v24 = vsel %vm1942_vm9, 1.0, %v2533_v39 }
 0xa3e   :  { %v1948_v16 = vmul.f32 0.3275911, %v1946_v56  ;;  %v1972_v29 = vmul.f32 %v1946_v56, %v1946_v56 }
 0xa3f   :  { %v1935_v44 = vpop.f32.mrf.mxu0 }
 0xa40   :  { %v1950_v12 = vadd.f32 1.0, %v1948_v16  ;;  %v1936_v1 = vadd.f32 %v1935_v44, %v1908_v31  ;;  %v1974_v2 = vsub.f32 0.0, %v1972_v29 }
 0xa42   :  { %2407 = vrcp.f32 %v1950_v12  ;;  %v1941_v8 = vmul.f32 0.70710677, %v1936_v1  ;;  %v1976_v62 = vmul.f32 1.442695, %v1974_v2  ;;  %v1939_v48 = vmul.f32 0.5, %v1936_v1 }
 0xa44   :  { %v1947_v63 = vand.u32 2147483647, %v1941_v8  ;;  %vm1943_vm6 = vcmp.ge.f32.partialorder %v1941_v8, 0.0 }
 0xa45   :  { %v1945_v31 = vsel %vm1943_vm6, 1.0, %v2533_v39 }
 0xa46   :  { %v1949_v17 = vmul.f32 0.3275911, %v1947_v63  ;;  %v1973_v13 = vmul.f32 %v1947_v63, %v1947_v63 }
 0xa48   :  { %v2408_v5 = vpop.eup %2407  ;;  %v1951_v25 = vadd.f32 1.0, %v1949_v17  ;;  %v1975_v40 = vsub.f32 0.0, %v1973_v13 }
 0xa49   :  { %v1954_v41 = vmul.f32 1.0614054, %v2408_v5 }
 0xa4a   :  { %2409 = vrcp.f32 %v1951_v25  ;;  %v1978_v30 = vmul.f32 1.442695, %v1975_v40  ;;  %v2076_v40 = vperm.slane %v3804_v36, 6 }
 0xa4b   :  { %v1956_v32 = vadd.f32 -1.4531521, %v1954_v41  ;;  %2411 = vpow2.f32 %v1976_v62 }
 0xa4c   :  { %2413 = vpow2.f32 %v1978_v30 }
 0xa4d   :  { %v1958_v23 = vmul.f32 %v2408_v5, %v1956_v32 }
 0xa4f   :  { %v1960_v43 = vadd.f32 1.4214138, %v1958_v23 }
 0xa50   :  { %v2410_v47 = vpop.eup %2409 }
 0xa51   :  { %v1962_v61 = vmul.f32 %v2408_v5, %v1960_v43  ;;  %v1955_v51 = vmul.f32 1.0614054, %v2410_v47  ;;  %v2412_v33 = vpop.eup %2411 }
 0xa52   :  { %v2414_v50 = vpop.eup %2413 }
 0xa53   :  { %v1964_v18 = vadd.f32 -0.28449672, %v1962_v61  ;;  %v1957_v20 = vadd.f32 -1.4531521, %v1955_v51 }
 0xa55   :  { %v1966_v19 = vmul.f32 %v2408_v5, %v1964_v18  ;;  %v1959_v55 = vmul.f32 %v2410_v47, %v1957_v20 }
 0xa57   :  { %v1968_v15 = vadd.f32 0.2548296, %v1966_v19  ;;  %v1961_v57 = vadd.f32 1.4214138, %v1959_v55 }
 0xa59   :  { %v1970_v9 = vmul.f32 %v2408_v5, %v1968_v15  ;;  %v1963_v58 = vmul.f32 %v2410_v47, %v1961_v57 }
 0xa5b   :  { %v1980_v49 = vmul.f32 %v2412_v33, %v1970_v9  ;;  %v1965_v26 = vadd.f32 -0.28449672, %v1963_v58 }
 0xa5d   :  { %v1982_v3 = vsub.f32 1.0, %v1980_v49  ;;  %v1967_v22 = vmul.f32 %v2410_v47, %v1965_v26 }
 0xa5f   :  { %v1984_v37 = vmul.f32 %v1982_v3, %v1944_v24  ;;  %v1969_v46 = vadd.f32 0.2548296, %v1967_v22 }
 0xa61   :  { %v1986_v45 = vadd.f32 1.0, %v1984_v37  ;;  %v1971_v42 = vmul.f32 %v2410_v47, %v1969_v46 }
 0xa63   :  { %v1988_v52 = vmul.f32 %v1986_v45, %v1938_v59  ;;  %v1981_v11 = vmul.f32 %v2414_v50, %v1971_v42 }
 0xa65   :  { %2023 = vmatmul.f32.vlgmr.msrb.gmra.mxu1 %v1988_v52  ;;  %v1983_v53 = vsub.f32 1.0, %v1981_v11 }
 0xa67   :  { %v1985_v4 = vmul.f32 %v1983_v53, %v1945_v31 }
 0xa69   :  { %v1987_v0 = vadd.f32 1.0, %v1985_v4 }
 0xa6b   :  { %v1989_v38 = vmul.f32 %v1987_v0, %v1939_v48 }
 0xa6d   :  { %2026 = vmatmul.f32.gmra.mxu1 %v1989_v38 }
 0xae2   :  { %v2024_v28 = vpop.f32.mrf.mxu1 }
 0xae3   :  { %v2025_v56 = vadd.f32 %v2024_v28, %v2006_v6 }
 0xae5   :  { %v2030_v54 = vadd.f32 %v2025_v56, %v3819_v10 }
 0xae7   :  { %v2032_v14 = vsel %vm4129_vm3, %v2030_v54, 0.0 }
 0xae8   :  { %2033 = vadd.xlane.f32.xlu1 %v2032_v14 }
 0xaea   :  { %v2027_v16 = vpop.f32.mrf.mxu1 }
 0xaeb   :  { %v2028_v7 = vadd.f32 %v2027_v16, %v2006_v6 }
 0xaed   :  { %v2031_v44 = vadd.f32 %v2028_v7, %v3823_v60 }
 0xaef   :  { %v2035_v12 = vsel %vm4130_vm5, %v2031_v44, 0.0 }
 0xaf0   :  { %2036 = vadd.xlane.f32.xlu2 %v2035_v12 }
 0xb5b   :  { %v2034_v1 = vpop.xlane.xlu1 %2033 }
 0xb5c   :  { %v2038_v35 = vmul.f32 %v2034_v1, %v3809_v27 }
 0xb5e   :  { %v2040_v8 = vsub.f32 %v2030_v54, %v2038_v35 }
 0xb60   :  { %v2042_v34 = vmul.f32 %v2040_v8, %v2040_v8 }
 0xb62   :  { %v2044_v21 = vsel %vm4131_vm8, %v2042_v34, 0.0 }
 0xb63   :  { %v2037_v63 = vpop.xlane.xlu2 %2036  ;;  %2045 = vadd.xlane.f32.xlu0 %v2044_v21 }
 0xb64   :  { %v2039_v10 = vmul.f32 %v2037_v63, %v3809_v27 }
 0xb66   :  { %v2041_v17 = vsub.f32 %v2031_v44, %v2039_v10 }
 0xb68   :  { %v2043_v5 = vmul.f32 %v2041_v17, %v2041_v17 }
 0xb6a   :  { %v2047_v29 = vsel %vm4132_vm15, %v2043_v5, 0.0 }
 0xb6b   :  { %2048 = vadd.xlane.f32.xlu1 %v2047_v29 }
 0xbd6   :  { %v2046_v60 = vpop.xlane.xlu0 %2045 }
 0xbd7   :  { %v2050_v25 = vmul.f32 %v2046_v60, %v3809_v27 }
 0xbd9   :  { %v2052_v41 = vadd.f32 1e-05, %v2050_v25 }
 0xbdb   :  { %2415 = vrsqrt.f32 %v2052_v41  ;;  %vm2060_vm12 = vweird.f32 %v2052_v41 }
 0xbde   :  { %v2049_v32 = vpop.xlane.xlu1 %2048 }
 0xbdf   :  { %v2051_v2 = vmul.f32 %v2049_v32, %v3809_v27  ;;  %v2079_v27 = vperm.slane %v3804_v36, 7 }
 0xbe1   :  { %v2416_v23 = vpop.eup %2415  ;;  %v2053_v43 = vadd.f32 1e-05, %v2051_v2 }
 0xbe2   :  { %v2055_v47 = vmul.f32 %v2416_v23, %v2052_v41  ;;  %vm2061_vm7 = vweird.f32 %v2416_v23 }
 0xbe3   :  { %2417 = vrsqrt.f32 %v2053_v43  ;;  %vm2062_vm4 = vmor %vm2060_vm12, %vm2061_vm7  ;;  %vm2070_vm1 = vweird.f32 %v2053_v43 }
 0xbe4   :  { %v2056_v62 = vmul.f32 %v2416_v23, %v2055_v47 }
 0xbe6   :  { %v2057_v13 = vmul.f32 0.5, %v2056_v62 }
 0xbe8   :  { %v2058_v61 = vsub.f32 1.5, %v2057_v13 }
 0xbe9   :  { %v2418_v51 = vpop.eup %2417 }
 0xbea   :  { %v2059_v18 = vmul.f32 %v2416_v23, %v2058_v61  ;;  %v2065_v20 = vmul.f32 %v2418_v51, %v2053_v43  ;;  %vm2071_vm10 = vweird.f32 %v2418_v51 }
 0xbeb   :  { %vm2072_vm13 = vmor %vm2070_vm1, %vm2071_vm10 }
 0xbec   :  { %v2063_v19 = vsel %vm2062_vm4, %v2416_v23, %v2059_v18  ;;  %v2066_v55 = vmul.f32 %v2418_v51, %v2065_v20 }
 0xbed   :  { %v2074_v15 = vmul.f32 %v2063_v19, %v2040_v8 }
 0xbee   :  { %v2067_v57 = vmul.f32 0.5, %v2066_v55 }
 0xbef   :  { %v2077_v30 = vmul.f32 %v2076_v40, %v2074_v15 }
 0xbf0   :  { %v2068_v9 = vsub.f32 1.5, %v2067_v57 }
 0xbf1   :  { %v2080_v58 = vadd.f32 %v2079_v27, %v2077_v30 }
 0xbf2   :  { %v2069_v33 = vmul.f32 %v2418_v51, %v2068_v9 }
 0xbf3   :  { %2082 = vst.msk [vmem:[#allocation8] sm:$0xff] %vm4133_vm11, %v2080_v58 }
 0xbf4   :  { %v2073_v49 = vsel %vm2072_vm13, %v2418_v51, %v2069_v33 }
 0xbf5   :  { %v2075_v26 = vmul.f32 %v2073_v49, %v2041_v17 }
 0xbf7   :  { %v2078_v3 = vmul.f32 %v2076_v40, %v2075_v26 }
 0xbf9   :  { %v2081_v36 = vadd.f32 %v2079_v27, %v2078_v3 }
 0xbfb   :  { %2083 = vst.msk [vmem:[#allocation8 + $0x8] sm:$0xff] %vm4134_vm2, %v2081_v36 }
 0xbfc   :  { %2096 = dma.vmem_to_hbm [thread:$0]  %s2089_s14, 256, %s2091_s16, [#allocation4], %s2525_s29, %s2525_s29, %s2526_s30  }
 0xbfd   :  { %2522 = dma.done.wait [#allocation4], 256  }
 0xbfe   :  { %2523 = vsyncadd [#allocation4], 4294967040 }
 0xbff   :  { %2101 = vsyncpa [#allocation3], 1 }
 0xc00   :  { %2102 = vsyncpa [#allocation6], 1 }
 0xc01   :  { %2103 = vsyncpa [#allocation4], 1 }

</bundles_post_ra>
